<compile_context>
chip_gen: v5e
topology: v5e:2x2
jax: 0.10.0
libtpu: 0.0.40
codegen_flags: <defaults>
</compile_context>

<pallas_src>
import functools

import jax
import jax.numpy as jnp
from jax.experimental import pallas as pl
from jax.experimental.pallas import tpu as pltpu


# --------------------------------------------------------------------------
# Fused Bottleneck kernel: one grid step == `batch_tile` images, all in VMEM.
# --------------------------------------------------------------------------
def _bottleneck_kernel(x_ref, colmask_ref, w1_ref, b1_ref, w2_ref, b2_ref,
                       w3_ref, b3_ref, o_ref, h1pad_ref, xcol_ref,
                       *, W, batch_tile):
    S = o_ref.shape[-1]            # H * W  (lane axis everywhere)
    P = w1_ref.shape[0]            # planes
    PAD = W + 1                    # flat halo width: covers dy = +/-1 row shifts
    bf16 = jnp.bfloat16

    # Zero only the halo strips each step (interior is fully overwritten per image).
    # NOTE: not gated on program_id==0 -- that would be wrong with the "parallel"
    # batch axis on megacore parts.
    zeros_pad = jnp.zeros((P, PAD), bf16)
    h1pad_ref[:, 0:PAD] = zeros_pad
    h1pad_ref[:, PAD + S:PAD + S + PAD] = zeros_pad

    # Column-edge validity masks ({0,1} in bf16), broadcast over channels.
    mask_l = colmask_ref[0:1, :]   # valid for kx == 0 taps (x >= 1)
    mask_r = colmask_ref[1:2, :]   # valid for kx == 2 taps (x <= W-2)

    for b in range(batch_tile):
        x_cf = x_ref[b]                                            # (Cin, S) bf16

        # ---- conv1 (1x1) + bn1 + relu : channels-first GEMM (no transpose) ----
        h1 = jnp.dot(w1_ref[...], x_cf, preferred_element_type=jnp.float32)
        h1 = jnp.maximum(h1 + b1_ref[...], 0.0)                    # (P, S) f32
        h1b = h1.astype(bf16)                                      # cast exactly once

        # ---- stage conv1 output into the flat zero-halo scratch (bf16) ----
        h1pad_ref[:, PAD:PAD + S] = h1b

        # ---- build the (9P, S) im2col matrix: 9 static lane-offset slices ----
        for ky in range(3):
            for kx in range(3):
                t = ky * 3 + kx
                if ky == 1 and kx == 1:
                    tap = h1b                                      # center tap, no shift
                else:
                    off = (ky - 1) * W + (kx - 1)
                    tap = h1pad_ref[:, PAD + off:PAD + off + S]    # (P, S) bf16
                if kx == 0:
                    tap = tap * mask_l
                elif kx == 2:
                    tap = tap * mask_r
                xcol_ref[t * P:(t + 1) * P, :] = tap

        # ---- conv2 (3x3, pad=1) + bn2 + relu : ONE im2col MXU dot ----
        h2 = jnp.dot(w2_ref[...], xcol_ref[...],
                     preferred_element_type=jnp.float32)           # (P, S) f32
        h2 = jnp.maximum(h2 + b2_ref[...], 0.0)

        # ---- conv3 (1x1) + bn3 + identity residual + relu ----
        o = jnp.dot(w3_ref[...], h2.astype(bf16),
                    preferred_element_type=jnp.float32)            # (Cout, S) f32
        o = jnp.maximum(o + b3_ref[...] + x_cf.astype(jnp.float32), 0.0)

        # Lane-dense store (last dim = S >= 128), no transpose needed.
        o_ref[b] = o.astype(o_ref.dtype)


# --------------------------------------------------------------------------
# Wrapper
# --------------------------------------------------------------------------
def _pick_vmem_limit_bytes():
    """Scoped-VMEM limit from hardware info: ~48 MiB on v7x, 64 MiB on v5e/v6e."""
    cap = 64 * 1024 * 1024                       # conservative fallback (v7x per-TC)
    try:
        info = pltpu.get_tpu_info()
        cap = int(getattr(info, "vmem_capacity_bytes", cap))
    except Exception:
        pass
    return max(32 * 1024 * 1024, min((cap * 3) // 4, 64 * 1024 * 1024))


def _bottleneck_forward_impl(x_nchw, p, batch_tile, single_buffer_weights):
    N, Cin, H, W = x_nchw.shape
    P = p["w1"].shape[0]
    Cout = p["w3"].shape[0]
    # Identity residual (downsample=None, stride=1) requires matching channels.
    assert Cin == Cout, ("identity residual requires inplanes == planes * expansion "
                         "(stride=1, downsample=None path)")
    assert N % batch_tile == 0
    S = H * W

    # bf16 input (halves HBM read traffic); free reshape, no transpose.
    x3 = x_nchw.reshape(N, Cin, S).astype(jnp.bfloat16)

    # Column-edge validity masks for the kx=0 / kx=2 taps (multiplicative {0,1}).
    x_idx = jnp.arange(S, dtype=jnp.int32) % W
    colmask = jnp.stack([(x_idx >= 1), (x_idx <= W - 2)]).astype(jnp.bfloat16)  # (2, S)

    def const_spec(shape):
        # Constant-per-grid-step operands; single-buffer them when supported.
        if single_buffer_weights:
            return pl.BlockSpec(shape, lambda n: (0,) * len(shape),
                                pipeline_mode=pl.Buffered(1))
        return pl.BlockSpec(shape, lambda n: (0,) * len(shape))

    kernel = functools.partial(_bottleneck_kernel, W=W, batch_tile=batch_tile)
    out = pl.pallas_call(
        kernel,
        out_shape=jax.ShapeDtypeStruct((N, Cout, S), jnp.float32),
        grid=(N // batch_tile,),
        in_specs=[
            pl.BlockSpec((batch_tile, Cin, S), lambda n: (n, 0, 0)),  # x (bf16, C-first)
            const_spec((2, S)),                                       # column-edge masks
            const_spec((P, Cin)),                                     # w1 (BN-folded, bf16)
            const_spec((P, 1)),                                       # b1
            const_spec((P, 9 * P)),                                   # w2 im2col-stacked
            const_spec((P, 1)),                                       # b2
            const_spec((Cout, P)),                                    # w3
            const_spec((Cout, 1)),                                    # b3
        ],
        out_specs=pl.BlockSpec((batch_tile, Cout, S), lambda n: (n, 0, 0)),
        scratch_shapes=[
            pltpu.VMEM((P, S + 2 * (W + 1)), jnp.bfloat16),   # flat zero-halo conv1 out
            pltpu.VMEM((9 * P, S), jnp.bfloat16),             # im2col staging (K-concat)
        ],
        compiler_params=pltpu.CompilerParams(
            dimension_semantics=("parallel",),                # megacore / 2 TCs on v7x
            vmem_limit_bytes=_pick_vmem_limit_bytes(),
        ),
    )(x3, colmask, p["w1"], p["b1"], p["w2"], p["b2"], p["w3"], p["b3"])

    return out.reshape(N, Cout, H, W)


def bottleneck_forward(x_nchw, p, *, batch_tile=1):
    """Fused Pallas Bottleneck forward.  x_nchw: (N, inplanes, H, W) float."""
    try:
        return _bottleneck_forward_impl(x_nchw, p, batch_tile, True)
    except Exception:
        # pipeline_mode=pl.Buffered(1) not supported by this Pallas build; fall
        # back to default double-buffered weight operands (correctness unaffected).
        return _bottleneck_forward_impl(x_nchw, p, batch_tile, False)


# --------------------------------------------------------------------------
# Plain-JAX f32 reference (same folded weights, NCHW) for the correctness check.
# --------------------------------------------------------------------------
def bottleneck_reference(x_nchw, p):
    # Match the kernel's bf16 input quantization so the comparison isolates the
    # in-kernel bf16 intermediate casts.
    x = x_nchw.astype(jnp.bfloat16).astype(jnp.float32)
    N, Cin, H, W = x.shape
    P = p["w1"].shape[0]
    w1 = p["w1"].astype(jnp.float32)
    w2 = p["w2"].astype(jnp.float32)
    w3 = p["w3"].astype(jnp.float32)

    h1 = jax.nn.relu(jnp.einsum("oc,nchw->nohw", w1, x) + p["b1"].reshape(1, P, 1, 1))
    hp = jnp.pad(h1, ((0, 0), (0, 0), (1, 1), (1, 1)))
    cols = [hp[:, :, ky:ky + H, kx:kx + W] for ky in range(3) for kx in range(3)]
    xcol = jnp.concatenate(cols, axis=1)                       # (N, 9P, H, W), tap-major
    h2 = jax.nn.relu(jnp.einsum("ok,nkhw->nohw", w2, xcol) + p["b2"].reshape(1, P, 1, 1))
    o = jnp.einsum("op,nphw->nohw", w3, h2) + p["b3"].reshape(1, -1, 1, 1) + x
    return jax.nn.relu(o)


# --------------------------------------------------------------------------
# Deterministic parameter construction (PyTorch layouts -> folded GEMM layouts)
# --------------------------------------------------------------------------
def make_params(key, inplanes, planes, expansion=2, eps=1e-5):
    cout = planes * expansion
    keys = jax.random.split(key, 15)

    def bn_fold(kg, kb, km, kv, c):
        gamma = 0.5 + jax.random.uniform(kg, (c,), jnp.float32)
        beta = 0.1 * jax.random.normal(kb, (c,), jnp.float32)
        mean = 0.1 * jax.random.normal(km, (c,), jnp.float32)
        var = 0.5 + jax.random.uniform(kv, (c,), jnp.float32)
        scale = gamma / jnp.sqrt(var + eps)
        bias = beta - mean * scale
        return scale, bias

    # PyTorch conv weights: (Cout, Cin, kh, kw).
    w1_pt = 0.1 * jax.random.normal(keys[0], (planes, inplanes, 1, 1), jnp.float32)
    w2_pt = 0.1 * jax.random.normal(keys[1], (planes, planes, 3, 3), jnp.float32)
    w3_pt = 0.1 * jax.random.normal(keys[2], (cout, planes, 1, 1), jnp.float32)

    s1, b1 = bn_fold(keys[3], keys[4], keys[5], keys[6], planes)
    s2, b2 = bn_fold(keys[7], keys[8], keys[9], keys[10], planes)
    s3, b3 = bn_fold(keys[11], keys[12], keys[13], keys[14], cout)

    # Channels-first GEMM layouts with the BN scale folded per output channel.
    w1 = w1_pt[:, :, 0, 0] * s1[:, None]                                     # (P, Cin)
    # im2col stacking: K index = (ky*3 + kx)*P + c_in
    w2 = (jnp.transpose(w2_pt, (0, 2, 3, 1)).reshape(planes, 9 * planes)
          * s2[:, None])                                                     # (P, 9P)
    w3 = w3_pt[:, :, 0, 0] * s3[:, None]                                     # (Cout, P)

    return dict(
        w1=w1.astype(jnp.bfloat16), b1=b1.reshape(planes, 1).astype(jnp.float32),
        w2=w2.astype(jnp.bfloat16), b2=b2.reshape(planes, 1).astype(jnp.float32),
        w3=w3.astype(jnp.bfloat16), b3=b3.reshape(cout, 1).astype(jnp.float32),
    )


if __name__ == "__main__":
    # Small shapes: batch=2, inplanes=8, planes=4 (expansion=2 -> out=8), 16x16 spatial.
    N, inplanes, planes, H, W = 2, 8, 4, 16, 16
    key = jax.random.PRNGKey(0)
    k_x, k_p = jax.random.split(key)

    x = jax.random.normal(k_x, (N, inplanes, H, W), jnp.float32)
    params = make_params(k_p, inplanes, planes)

    ref = jax.block_until_ready(bottleneck_reference(x, params))

    out1 = jax.block_until_ready(bottleneck_forward(x, params))                 # 1 image / step
    out2 = jax.block_until_ready(bottleneck_forward(x, params, batch_tile=2))   # batched step

    assert out1.shape == (N, planes * 2, H, W)
    # bf16 MXU inputs / bf16 staged intermediates with f32 accumulation vs f32 reference.
    assert jnp.allclose(out1, ref, atol=1e-2, rtol=1e-2), "mismatch vs reference (batch_tile=1)"
    assert jnp.allclose(out2, ref, atol=1e-2, rtol=1e-2), "mismatch vs reference (batch_tile=2)"

    print("KERNEL_OK")
</pallas_src>

<mosaic_0001>
module attributes {stable_mosaic.version = 11 : i64} {
  func.func @_bottleneck_kernel(%arg0: i32, %arg1: memref<1x8x256xbf16, #tpu.memory_space<vmem>>, %arg2: memref<2x256xbf16, #tpu.memory_space<vmem>>, %arg3: memref<4x8xbf16, #tpu.memory_space<vmem>>, %arg4: memref<4x1xf32, #tpu.memory_space<vmem>>, %arg5: memref<4x36xbf16, #tpu.memory_space<vmem>>, %arg6: memref<4x1xf32, #tpu.memory_space<vmem>>, %arg7: memref<8x4xbf16, #tpu.memory_space<vmem>>, %arg8: memref<8x1xf32, #tpu.memory_space<vmem>>, %arg9: memref<1x8x256xf32, #tpu.memory_space<vmem>>, %arg10: memref<4x290xbf16, #tpu.memory_space<vmem>>, %arg11: memref<36x256xbf16, #tpu.memory_space<vmem>>) attributes {dimension_semantics = [#tpu.dimension_semantics<parallel>], iteration_bounds = array<i64: 2>, scalar_prefetch = 0 : i64, scratch_operands = 2 : i64, tpu.core_type = #tpu.core_type<tc>, window_params = [{transform_indices = @transform_0, window_bounds = array<i64: 1, 8, 256>}, {pipeline_mode = #tpu.pipeline_mode<synchronous>, transform_indices = @transform_1, window_bounds = array<i64: 2, 256>}, {pipeline_mode = #tpu.pipeline_mode<synchronous>, transform_indices = @transform_2, window_bounds = array<i64: 4, 8>}, {pipeline_mode = #tpu.pipeline_mode<synchronous>, transform_indices = @transform_3, window_bounds = array<i64: 4, 1>}, {pipeline_mode = #tpu.pipeline_mode<synchronous>, transform_indices = @transform_4, window_bounds = array<i64: 4, 36>}, {pipeline_mode = #tpu.pipeline_mode<synchronous>, transform_indices = @transform_5, window_bounds = array<i64: 4, 1>}, {pipeline_mode = #tpu.pipeline_mode<synchronous>, transform_indices = @transform_6, window_bounds = array<i64: 8, 4>}, {pipeline_mode = #tpu.pipeline_mode<synchronous>, transform_indices = @transform_7, window_bounds = array<i64: 8, 1>}, {transform_indices = @transform_8, window_bounds = array<i64: 1, 8, 256>}]} {
    %cst = arith.constant 0.000000e+00 : bf16
    %0 = vector.broadcast %cst : bf16 to vector<4x17xbf16>
    %c0 = arith.constant 0 : index
    %c0_0 = arith.constant 0 : index
    %1 = vector.load %arg10[%c0, %c0_0] : memref<4x290xbf16, #tpu.memory_space<vmem>>, vector<4x17xbf16>
    tpu.vector_store %arg10[%c0, %c0_0], %0 {strides = array<i32>} : memref<4x290xbf16, #tpu.memory_space<vmem>>, vector<4x17xbf16>,
    %c0_1 = arith.constant 0 : index
    %c273 = arith.constant 273 : index
    %2 = vector.load %arg10[%c0_1, %c273] : memref<4x290xbf16, #tpu.memory_space<vmem>>, vector<4x17xbf16>
    tpu.vector_store %arg10[%c0_1, %c273], %0 {strides = array<i32>} : memref<4x290xbf16, #tpu.memory_space<vmem>>, vector<4x17xbf16>,
    %c0_2 = arith.constant 0 : index
    %c0_3 = arith.constant 0 : index
    %3 = vector.load %arg2[%c0_2, %c0_3] : memref<2x256xbf16, #tpu.memory_space<vmem>>, vector<1x256xbf16>
    %c1 = arith.constant 1 : index
    %c0_4 = arith.constant 0 : index
    %4 = vector.load %arg2[%c1, %c0_4] : memref<2x256xbf16, #tpu.memory_space<vmem>>, vector<1x256xbf16>
    %c0_5 = arith.constant 0 : index
    %c0_6 = arith.constant 0 : index
    %c0_7 = arith.constant 0 : index
    %5 = vector.load %arg1[%c0_5, %c0_6, %c0_7] : memref<1x8x256xbf16, #tpu.memory_space<vmem>>, vector<1x8x256xbf16>
    %6 = vector.shape_cast %5 : vector<1x8x256xbf16> to vector<8x256xbf16>
    %c0_8 = arith.constant 0 : index
    %c0_9 = arith.constant 0 : index
    %7 = vector.load %arg3[%c0_8, %c0_9] : memref<4x8xbf16, #tpu.memory_space<vmem>>, vector<4x8xbf16>
    %cst_10 = arith.constant dense<0.000000e+00> : vector<4x256xf32>
    %8 = tpu.matmul %7, %6, %cst_10 {dimension_numbers = #tpu.dot_dimension_numbers<[1], [0], [0], [1], [0, 0, 1, 1], [], []>} : vector<4x8xbf16>, vector<8x256xbf16>, vector<4x256xf32> -> vector<4x256xf32>
    %c0_11 = arith.constant 0 : index
    %c0_12 = arith.constant 0 : index
    %9 = vector.load %arg4[%c0_11, %c0_12] : memref<4x1xf32, #tpu.memory_space<vmem>>, vector<4x1xf32>
    %10 = vector.broadcast %9 : vector<4x1xf32> to vector<4x256xf32>
    %11 = arith.addf %8, %10 : vector<4x256xf32>
    %cst_13 = arith.constant 0.000000e+00 : f32
    %12 = vector.broadcast %cst_13 : f32 to vector<4x256xf32>
    %13 = arith.maximumf %11, %12 : vector<4x256xf32>
    %14 = arith.truncf %13 : vector<4x256xf32> to vector<4x256xbf16>
    %c0_14 = arith.constant 0 : index
    %c17 = arith.constant 17 : index
    %15 = vector.load %arg10[%c0_14, %c17] : memref<4x290xbf16, #tpu.memory_space<vmem>>, vector<4x256xbf16>
    tpu.vector_store %arg10[%c0_14, %c17], %14 {strides = array<i32>} : memref<4x290xbf16, #tpu.memory_space<vmem>>, vector<4x256xbf16>,
    %c0_15 = arith.constant 0 : index
    %c0_16 = arith.constant 0 : index
    %16 = vector.load %arg10[%c0_15, %c0_16] : memref<4x290xbf16, #tpu.memory_space<vmem>>, vector<4x256xbf16>
    %17 = vector.broadcast %3 : vector<1x256xbf16> to vector<4x256xbf16>
    %18 = arith.mulf %16, %17 : vector<4x256xbf16>
    %c0_17 = arith.constant 0 : index
    %c0_18 = arith.constant 0 : index
    %19 = vector.load %arg11[%c0_17, %c0_18] : memref<36x256xbf16, #tpu.memory_space<vmem>>, vector<4x256xbf16>
    tpu.vector_store %arg11[%c0_17, %c0_18], %18 {strides = array<i32>} : memref<36x256xbf16, #tpu.memory_space<vmem>>, vector<4x256xbf16>,
    %c0_19 = arith.constant 0 : index
    %c1_20 = arith.constant 1 : index
    %20 = vector.load %arg10[%c0_19, %c1_20] : memref<4x290xbf16, #tpu.memory_space<vmem>>, vector<4x256xbf16>
    %c4 = arith.constant 4 : index
    %c0_21 = arith.constant 0 : index
    %21 = vector.load %arg11[%c4, %c0_21] : memref<36x256xbf16, #tpu.memory_space<vmem>>, vector<4x256xbf16>
    tpu.vector_store %arg11[%c4, %c0_21], %20 {strides = array<i32>} : memref<36x256xbf16, #tpu.memory_space<vmem>>, vector<4x256xbf16>,
    %c0_22 = arith.constant 0 : index
    %c2 = arith.constant 2 : index
    %22 = vector.load %arg10[%c0_22, %c2] : memref<4x290xbf16, #tpu.memory_space<vmem>>, vector<4x256xbf16>
    %23 = vector.broadcast %4 : vector<1x256xbf16> to vector<4x256xbf16>
    %24 = arith.mulf %22, %23 : vector<4x256xbf16>
    %c8 = arith.constant 8 : index
    %c0_23 = arith.constant 0 : index
    %25 = vector.load %arg11[%c8, %c0_23] : memref<36x256xbf16, #tpu.memory_space<vmem>>, vector<4x256xbf16>
    tpu.vector_store %arg11[%c8, %c0_23], %24 {strides = array<i32>} : memref<36x256xbf16, #tpu.memory_space<vmem>>, vector<4x256xbf16>,
    %c0_24 = arith.constant 0 : index
    %c16 = arith.constant 16 : index
    %26 = vector.load %arg10[%c0_24, %c16] : memref<4x290xbf16, #tpu.memory_space<vmem>>, vector<4x256xbf16>
    %27 = vector.broadcast %3 : vector<1x256xbf16> to vector<4x256xbf16>
    %28 = arith.mulf %26, %27 : vector<4x256xbf16>
    %c12 = arith.constant 12 : index
    %c0_25 = arith.constant 0 : index
    %29 = vector.load %arg11[%c12, %c0_25] : memref<36x256xbf16, #tpu.memory_space<vmem>>, vector<4x256xbf16>
    tpu.vector_store %arg11[%c12, %c0_25], %28 {strides = array<i32>} : memref<36x256xbf16, #tpu.memory_space<vmem>>, vector<4x256xbf16>,
    %c16_26 = arith.constant 16 : index
    %c0_27 = arith.constant 0 : index
    %30 = vector.load %arg11[%c16_26, %c0_27] : memref<36x256xbf16, #tpu.memory_space<vmem>>, vector<4x256xbf16>
    tpu.vector_store %arg11[%c16_26, %c0_27], %14 {strides = array<i32>} : memref<36x256xbf16, #tpu.memory_space<vmem>>, vector<4x256xbf16>,
    %c0_28 = arith.constant 0 : index
    %c18 = arith.constant 18 : index
    %31 = vector.load %arg10[%c0_28, %c18] : memref<4x290xbf16, #tpu.memory_space<vmem>>, vector<4x256xbf16>
    %32 = vector.broadcast %4 : vector<1x256xbf16> to vector<4x256xbf16>
    %33 = arith.mulf %31, %32 : vector<4x256xbf16>
    %c20 = arith.constant 20 : index
    %c0_29 = arith.constant 0 : index
    %34 = vector.load %arg11[%c20, %c0_29] : memref<36x256xbf16, #tpu.memory_space<vmem>>, vector<4x256xbf16>
    tpu.vector_store %arg11[%c20, %c0_29], %33 {strides = array<i32>} : memref<36x256xbf16, #tpu.memory_space<vmem>>, vector<4x256xbf16>,
    %c0_30 = arith.constant 0 : index
    %c32 = arith.constant 32 : index
    %35 = vector.load %arg10[%c0_30, %c32] : memref<4x290xbf16, #tpu.memory_space<vmem>>, vector<4x256xbf16>
    %36 = vector.broadcast %3 : vector<1x256xbf16> to vector<4x256xbf16>
    %37 = arith.mulf %35, %36 : vector<4x256xbf16>
    %c24 = arith.constant 24 : index
    %c0_31 = arith.constant 0 : index
    %38 = vector.load %arg11[%c24, %c0_31] : memref<36x256xbf16, #tpu.memory_space<vmem>>, vector<4x256xbf16>
    tpu.vector_store %arg11[%c24, %c0_31], %37 {strides = array<i32>} : memref<36x256xbf16, #tpu.memory_space<vmem>>, vector<4x256xbf16>,
    %c0_32 = arith.constant 0 : index
    %c33 = arith.constant 33 : index
    %39 = vector.load %arg10[%c0_32, %c33] : memref<4x290xbf16, #tpu.memory_space<vmem>>, vector<4x256xbf16>
    %c28 = arith.constant 28 : index
    %c0_33 = arith.constant 0 : index
    %40 = vector.load %arg11[%c28, %c0_33] : memref<36x256xbf16, #tpu.memory_space<vmem>>, vector<4x256xbf16>
    tpu.vector_store %arg11[%c28, %c0_33], %39 {strides = array<i32>} : memref<36x256xbf16, #tpu.memory_space<vmem>>, vector<4x256xbf16>,
    %c0_34 = arith.constant 0 : index
    %c34 = arith.constant 34 : index
    %41 = vector.load %arg10[%c0_34, %c34] : memref<4x290xbf16, #tpu.memory_space<vmem>>, vector<4x256xbf16>
    %42 = vector.broadcast %4 : vector<1x256xbf16> to vector<4x256xbf16>
    %43 = arith.mulf %41, %42 : vector<4x256xbf16>
    %c32_35 = arith.constant 32 : index
    %c0_36 = arith.constant 0 : index
    %44 = vector.load %arg11[%c32_35, %c0_36] : memref<36x256xbf16, #tpu.memory_space<vmem>>, vector<4x256xbf16>
    tpu.vector_store %arg11[%c32_35, %c0_36], %43 {strides = array<i32>} : memref<36x256xbf16, #tpu.memory_space<vmem>>, vector<4x256xbf16>,
    %c0_37 = arith.constant 0 : index
    %c0_38 = arith.constant 0 : index
    %45 = vector.load %arg5[%c0_37, %c0_38] : memref<4x36xbf16, #tpu.memory_space<vmem>>, vector<4x36xbf16>
    %c0_39 = arith.constant 0 : index
    %c0_40 = arith.constant 0 : index
    %46 = vector.load %arg11[%c0_39, %c0_40] : memref<36x256xbf16, #tpu.memory_space<vmem>>, vector<36x256xbf16>
    %cst_41 = arith.constant dense<0.000000e+00> : vector<4x256xf32>
    %47 = tpu.matmul %45, %46, %cst_41 {dimension_numbers = #tpu.dot_dimension_numbers<[1], [0], [0], [1], [0, 0, 1, 1], [], []>} : vector<4x36xbf16>, vector<36x256xbf16>, vector<4x256xf32> -> vector<4x256xf32>
    %c0_42 = arith.constant 0 : index
    %c0_43 = arith.constant 0 : index
    %48 = vector.load %arg6[%c0_42, %c0_43] : memref<4x1xf32, #tpu.memory_space<vmem>>, vector<4x1xf32>
    %49 = vector.broadcast %48 : vector<4x1xf32> to vector<4x256xf32>
    %50 = arith.addf %47, %49 : vector<4x256xf32>
    %cst_44 = arith.constant 0.000000e+00 : f32
    %51 = vector.broadcast %cst_44 : f32 to vector<4x256xf32>
    %52 = arith.maximumf %50, %51 : vector<4x256xf32>
    %c0_45 = arith.constant 0 : index
    %c0_46 = arith.constant 0 : index
    %53 = vector.load %arg7[%c0_45, %c0_46] : memref<8x4xbf16, #tpu.memory_space<vmem>>, vector<8x4xbf16>
    %54 = arith.truncf %52 : vector<4x256xf32> to vector<4x256xbf16>
    %cst_47 = arith.constant dense<0.000000e+00> : vector<8x256xf32>
    %55 = tpu.matmul %53, %54, %cst_47 {dimension_numbers = #tpu.dot_dimension_numbers<[1], [0], [0], [1], [0, 0, 1, 1], [], []>} : vector<8x4xbf16>, vector<4x256xbf16>, vector<8x256xf32> -> vector<8x256xf32>
    %c0_48 = arith.constant 0 : index
    %c0_49 = arith.constant 0 : index
    %56 = vector.load %arg8[%c0_48, %c0_49] : memref<8x1xf32, #tpu.memory_space<vmem>>, vector<8x1xf32>
    %57 = vector.broadcast %56 : vector<8x1xf32> to vector<8x256xf32>
    %58 = arith.addf %55, %57 : vector<8x256xf32>
    %59 = arith.extf %6 : vector<8x256xbf16> to vector<8x256xf32>
    %60 = arith.addf %58, %59 : vector<8x256xf32>
    %cst_50 = arith.constant 0.000000e+00 : f32
    %61 = vector.broadcast %cst_50 : f32 to vector<8x256xf32>
    %62 = arith.maximumf %60, %61 : vector<8x256xf32>
    %c0_51 = arith.constant 0 : index
    %c0_52 = arith.constant 0 : index
    %c0_53 = arith.constant 0 : index
    %63 = vector.load %arg9[%c0_51, %c0_52, %c0_53] : memref<1x8x256xf32, #tpu.memory_space<vmem>>, vector<1x8x256xf32>
    %64 = vector.shape_cast %63 : vector<1x8x256xf32> to vector<8x256xf32>
    %65 = vector.shape_cast %62 : vector<8x256xf32> to vector<1x8x256xf32>
    tpu.vector_store %arg9[%c0_51, %c0_52, %c0_53], %65 {strides = array<i32>} : memref<1x8x256xf32, #tpu.memory_space<vmem>>, vector<1x8x256xf32>,
    return
  }
  func.func @transform_0(%arg0: i32) -> (i32, i32, i32) {
    %c0_i32 = arith.constant 0 : i32
    %c0_i32_0 = arith.constant 0 : i32
    %c0_i32_1 = arith.constant 0 : i32
    return %arg0, %c0_i32, %c0_i32_0 : i32, i32, i32
  }
  func.func @transform_1(%arg0: i32) -> (i32, i32) {
    %c0_i32 = arith.constant 0 : i32
    %c0_i32_0 = arith.constant 0 : i32
    %c0_i32_1 = arith.constant 0 : i32
    return %c0_i32, %c0_i32_0 : i32, i32
  }
  func.func @transform_2(%arg0: i32) -> (i32, i32) {
    %c0_i32 = arith.constant 0 : i32
    %c0_i32_0 = arith.constant 0 : i32
    %c0_i32_1 = arith.constant 0 : i32
    return %c0_i32, %c0_i32_0 : i32, i32
  }
  func.func @transform_3(%arg0: i32) -> (i32, i32) {
    %c0_i32 = arith.constant 0 : i32
    %c0_i32_0 = arith.constant 0 : i32
    %c0_i32_1 = arith.constant 0 : i32
    return %c0_i32, %c0_i32_0 : i32, i32
  }
  func.func @transform_4(%arg0: i32) -> (i32, i32) {
    %c0_i32 = arith.constant 0 : i32
    %c0_i32_0 = arith.constant 0 : i32
    %c0_i32_1 = arith.constant 0 : i32
    return %c0_i32, %c0_i32_0 : i32, i32
  }
  func.func @transform_5(%arg0: i32) -> (i32, i32) {
    %c0_i32 = arith.constant 0 : i32
    %c0_i32_0 = arith.constant 0 : i32
    %c0_i32_1 = arith.constant 0 : i32
    return %c0_i32, %c0_i32_0 : i32, i32
  }
  func.func @transform_6(%arg0: i32) -> (i32, i32) {
    %c0_i32 = arith.constant 0 : i32
    %c0_i32_0 = arith.constant 0 : i32
    %c0_i32_1 = arith.constant 0 : i32
    return %c0_i32, %c0_i32_0 : i32, i32
  }
  func.func @transform_7(%arg0: i32) -> (i32, i32) {
    %c0_i32 = arith.constant 0 : i32
    %c0_i32_0 = arith.constant 0 : i32
    %c0_i32_1 = arith.constant 0 : i32
    return %c0_i32, %c0_i32_0 : i32, i32
  }
  func.func @transform_8(%arg0: i32) -> (i32, i32, i32) {
    %c0_i32 = arith.constant 0 : i32
    %c0_i32_0 = arith.constant 0 : i32
    %c0_i32_1 = arith.constant 0 : i32
    return %arg0, %c0_i32, %c0_i32_0 : i32, i32, i32
  }
}

module attributes {stable_mosaic.version = 11 : i64} {
  func.func @_bottleneck_kernel(%arg0: i32, %arg1: memref<1x8x256xbf16, #tpu.memory_space<vmem>>, %arg2: memref<2x256xbf16, #tpu.memory_space<vmem>>, %arg3: memref<4x8xbf16, #tpu.memory_space<vmem>>, %arg4: memref<4x1xf32, #tpu.memory_space<vmem>>, %arg5: memref<4x36xbf16, #tpu.memory_space<vmem>>, %arg6: memref<4x1xf32, #tpu.memory_space<vmem>>, %arg7: memref<8x4xbf16, #tpu.memory_space<vmem>>, %arg8: memref<8x1xf32, #tpu.memory_space<vmem>>, %arg9: memref<1x8x256xf32, #tpu.memory_space<vmem>>, %arg10: memref<4x290xbf16, #tpu.memory_space<vmem>>, %arg11: memref<36x256xbf16, #tpu.memory_space<vmem>>) attributes {dimension_semantics = [#tpu.dimension_semantics<parallel>], iteration_bounds = array<i64: 2>, scalar_prefetch = 0 : i64, scratch_operands = 2 : i64, tpu.core_type = #tpu.core_type<tc>, window_params = [{transform_indices = @transform_0, window_bounds = array<i64: 1, 8, 256>}, {pipeline_mode = #tpu.pipeline_mode<synchronous>, transform_indices = @transform_1, window_bounds = array<i64: 2, 256>}, {pipeline_mode = #tpu.pipeline_mode<synchronous>, transform_indices = @transform_2, window_bounds = array<i64: 4, 8>}, {pipeline_mode = #tpu.pipeline_mode<synchronous>, transform_indices = @transform_3, window_bounds = array<i64: 4, 1>}, {pipeline_mode = #tpu.pipeline_mode<synchronous>, transform_indices = @transform_4, window_bounds = array<i64: 4, 36>}, {pipeline_mode = #tpu.pipeline_mode<synchronous>, transform_indices = @transform_5, window_bounds = array<i64: 4, 1>}, {pipeline_mode = #tpu.pipeline_mode<synchronous>, transform_indices = @transform_6, window_bounds = array<i64: 8, 4>}, {pipeline_mode = #tpu.pipeline_mode<synchronous>, transform_indices = @transform_7, window_bounds = array<i64: 8, 1>}, {transform_indices = @transform_8, window_bounds = array<i64: 1, 8, 256>}]} {
    %cst = arith.constant 0.000000e+00 : bf16
    %0 = vector.broadcast %cst : bf16 to vector<4x17xbf16>
    %c0 = arith.constant 0 : index
    %c0_0 = arith.constant 0 : index
    %1 = vector.load %arg10[%c0, %c0_0] : memref<4x290xbf16, #tpu.memory_space<vmem>>, vector<4x17xbf16>
    tpu.vector_store %arg10[%c0, %c0_0], %0 {strides = array<i32>} : memref<4x290xbf16, #tpu.memory_space<vmem>>, vector<4x17xbf16>,
    %c0_1 = arith.constant 0 : index
    %c273 = arith.constant 273 : index
    %2 = vector.load %arg10[%c0_1, %c273] : memref<4x290xbf16, #tpu.memory_space<vmem>>, vector<4x17xbf16>
    tpu.vector_store %arg10[%c0_1, %c273], %0 {strides = array<i32>} : memref<4x290xbf16, #tpu.memory_space<vmem>>, vector<4x17xbf16>,
    %c0_2 = arith.constant 0 : index
    %c0_3 = arith.constant 0 : index
    %3 = vector.load %arg2[%c0_2, %c0_3] : memref<2x256xbf16, #tpu.memory_space<vmem>>, vector<1x256xbf16>
    %c1 = arith.constant 1 : index
    %c0_4 = arith.constant 0 : index
    %4 = vector.load %arg2[%c1, %c0_4] : memref<2x256xbf16, #tpu.memory_space<vmem>>, vector<1x256xbf16>
    %c0_5 = arith.constant 0 : index
    %c0_6 = arith.constant 0 : index
    %c0_7 = arith.constant 0 : index
    %5 = vector.load %arg1[%c0_5, %c0_6, %c0_7] : memref<1x8x256xbf16, #tpu.memory_space<vmem>>, vector<1x8x256xbf16>
    %6 = vector.shape_cast %5 : vector<1x8x256xbf16> to vector<8x256xbf16>
    %c0_8 = arith.constant 0 : index
    %c0_9 = arith.constant 0 : index
    %7 = vector.load %arg3[%c0_8, %c0_9] : memref<4x8xbf16, #tpu.memory_space<vmem>>, vector<4x8xbf16>
    %cst_10 = arith.constant dense<0.000000e+00> : vector<4x256xf32>
    %8 = tpu.matmul %7, %6, %cst_10 {dimension_numbers = #tpu.dot_dimension_numbers<[1], [0], [0], [1], [0, 0, 1, 1], [], []>} : vector<4x8xbf16>, vector<8x256xbf16>, vector<4x256xf32> -> vector<4x256xf32>
    %c0_11 = arith.constant 0 : index
    %c0_12 = arith.constant 0 : index
    %9 = vector.load %arg4[%c0_11, %c0_12] : memref<4x1xf32, #tpu.memory_space<vmem>>, vector<4x1xf32>
    %10 = vector.broadcast %9 : vector<4x1xf32> to vector<4x256xf32>
    %11 = arith.addf %8, %10 : vector<4x256xf32>
    %cst_13 = arith.constant 0.000000e+00 : f32
    %12 = vector.broadcast %cst_13 : f32 to vector<4x256xf32>
    %13 = arith.maximumf %11, %12 : vector<4x256xf32>
    %14 = arith.truncf %13 : vector<4x256xf32> to vector<4x256xbf16>
    %c0_14 = arith.constant 0 : index
    %c17 = arith.constant 17 : index
    %15 = vector.load %arg10[%c0_14, %c17] : memref<4x290xbf16, #tpu.memory_space<vmem>>, vector<4x256xbf16>
    tpu.vector_store %arg10[%c0_14, %c17], %14 {strides = array<i32>} : memref<4x290xbf16, #tpu.memory_space<vmem>>, vector<4x256xbf16>,
    %c0_15 = arith.constant 0 : index
    %c0_16 = arith.constant 0 : index
    %16 = vector.load %arg10[%c0_15, %c0_16] : memref<4x290xbf16, #tpu.memory_space<vmem>>, vector<4x256xbf16>
    %17 = vector.broadcast %3 : vector<1x256xbf16> to vector<4x256xbf16>
    %18 = arith.mulf %16, %17 : vector<4x256xbf16>
    %c0_17 = arith.constant 0 : index
    %c0_18 = arith.constant 0 : index
    %19 = vector.load %arg11[%c0_17, %c0_18] : memref<36x256xbf16, #tpu.memory_space<vmem>>, vector<4x256xbf16>
    tpu.vector_store %arg11[%c0_17, %c0_18], %18 {strides = array<i32>} : memref<36x256xbf16, #tpu.memory_space<vmem>>, vector<4x256xbf16>,
    %c0_19 = arith.constant 0 : index
    %c1_20 = arith.constant 1 : index
    %20 = vector.load %arg10[%c0_19, %c1_20] : memref<4x290xbf16, #tpu.memory_space<vmem>>, vector<4x256xbf16>
    %c4 = arith.constant 4 : index
    %c0_21 = arith.constant 0 : index
    %21 = vector.load %arg11[%c4, %c0_21] : memref<36x256xbf16, #tpu.memory_space<vmem>>, vector<4x256xbf16>
    tpu.vector_store %arg11[%c4, %c0_21], %20 {strides = array<i32>} : memref<36x256xbf16, #tpu.memory_space<vmem>>, vector<4x256xbf16>,
    %c0_22 = arith.constant 0 : index
    %c2 = arith.constant 2 : index
    %22 = vector.load %arg10[%c0_22, %c2] : memref<4x290xbf16, #tpu.memory_space<vmem>>, vector<4x256xbf16>
    %23 = vector.broadcast %4 : vector<1x256xbf16> to vector<4x256xbf16>
    %24 = arith.mulf %22, %23 : vector<4x256xbf16>
    %c8 = arith.constant 8 : index
    %c0_23 = arith.constant 0 : index
    %25 = vector.load %arg11[%c8, %c0_23] : memref<36x256xbf16, #tpu.memory_space<vmem>>, vector<4x256xbf16>
    tpu.vector_store %arg11[%c8, %c0_23], %24 {strides = array<i32>} : memref<36x256xbf16, #tpu.memory_space<vmem>>, vector<4x256xbf16>,
    %c0_24 = arith.constant 0 : index
    %c16 = arith.constant 16 : index
    %26 = vector.load %arg10[%c0_24, %c16] : memref<4x290xbf16, #tpu.memory_space<vmem>>, vector<4x256xbf16>
    %27 = vector.broadcast %3 : vector<1x256xbf16> to vector<4x256xbf16>
    %28 = arith.mulf %26, %27 : vector<4x256xbf16>
    %c12 = arith.constant 12 : index
    %c0_25 = arith.constant 0 : index
    %29 = vector.load %arg11[%c12, %c0_25] : memref<36x256xbf16, #tpu.memory_space<vmem>>, vector<4x256xbf16>
    tpu.vector_store %arg11[%c12, %c0_25], %28 {strides = array<i32>} : memref<36x256xbf16, #tpu.memory_space<vmem>>, vector<4x256xbf16>,
    %c16_26 = arith.constant 16 : index
    %c0_27 = arith.constant 0 : index
    %30 = vector.load %arg11[%c16_26, %c0_27] : memref<36x256xbf16, #tpu.memory_space<vmem>>, vector<4x256xbf16>
    tpu.vector_store %arg11[%c16_26, %c0_27], %14 {strides = array<i32>} : memref<36x256xbf16, #tpu.memory_space<vmem>>, vector<4x256xbf16>,
    %c0_28 = arith.constant 0 : index
    %c18 = arith.constant 18 : index
    %31 = vector.load %arg10[%c0_28, %c18] : memref<4x290xbf16, #tpu.memory_space<vmem>>, vector<4x256xbf16>
    %32 = vector.broadcast %4 : vector<1x256xbf16> to vector<4x256xbf16>
    %33 = arith.mulf %31, %32 : vector<4x256xbf16>
    %c20 = arith.constant 20 : index
    %c0_29 = arith.constant 0 : index
    %34 = vector.load %arg11[%c20, %c0_29] : memref<36x256xbf16, #tpu.memory_space<vmem>>, vector<4x256xbf16>
    tpu.vector_store %arg11[%c20, %c0_29], %33 {strides = array<i32>} : memref<36x256xbf16, #tpu.memory_space<vmem>>, vector<4x256xbf16>,
    %c0_30 = arith.constant 0 : index
    %c32 = arith.constant 32 : index
    %35 = vector.load %arg10[%c0_30, %c32] : memref<4x290xbf16, #tpu.memory_space<vmem>>, vector<4x256xbf16>
    %36 = vector.broadcast %3 : vector<1x256xbf16> to vector<4x256xbf16>
    %37 = arith.mulf %35, %36 : vector<4x256xbf16>
    %c24 = arith.constant 24 : index
    %c0_31 = arith.constant 0 : index
    %38 = vector.load %arg11[%c24, %c0_31] : memref<36x256xbf16, #tpu.memory_space<vmem>>, vector<4x256xbf16>
    tpu.vector_store %arg11[%c24, %c0_31], %37 {strides = array<i32>} : memref<36x256xbf16, #tpu.memory_space<vmem>>, vector<4x256xbf16>,
    %c0_32 = arith.constant 0 : index
    %c33 = arith.constant 33 : index
    %39 = vector.load %arg10[%c0_32, %c33] : memref<4x290xbf16, #tpu.memory_space<vmem>>, vector<4x256xbf16>
    %c28 = arith.constant 28 : index
    %c0_33 = arith.constant 0 : index
    %40 = vector.load %arg11[%c28, %c0_33] : memref<36x256xbf16, #tpu.memory_space<vmem>>, vector<4x256xbf16>
    tpu.vector_store %arg11[%c28, %c0_33], %39 {strides = array<i32>} : memref<36x256xbf16, #tpu.memory_space<vmem>>, vector<4x256xbf16>,
    %c0_34 = arith.constant 0 : index
    %c34 = arith.constant 34 : index
    %41 = vector.load %arg10[%c0_34, %c34] : memref<4x290xbf16, #tpu.memory_space<vmem>>, vector<4x256xbf16>
    %42 = vector.broadcast %4 : vector<1x256xbf16> to vector<4x256xbf16>
    %43 = arith.mulf %41, %42 : vector<4x256xbf16>
    %c32_35 = arith.constant 32 : index
    %c0_36 = arith.constant 0 : index
    %44 = vector.load %arg11[%c32_35, %c0_36] : memref<36x256xbf16, #tpu.memory_space<vmem>>, vector<4x256xbf16>
    tpu.vector_store %arg11[%c32_35, %c0_36], %43 {strides = array<i32>} : memref<36x256xbf16, #tpu.memory_space<vmem>>, vector<4x256xbf16>,
    %c0_37 = arith.constant 0 : index
    %c0_38 = arith.constant 0 : index
    %45 = vector.load %arg5[%c0_37, %c0_38] : memref<4x36xbf16, #tpu.memory_space<vmem>>, vector<4x36xbf16>
    %c0_39 = arith.constant 0 : index
    %c0_40 = arith.constant 0 : index
    %46 = vector.load %arg11[%c0_39, %c0_40] : memref<36x256xbf16, #tpu.memory_space<vmem>>, vector<36x256xbf16>
    %cst_41 = arith.constant dense<0.000000e+00> : vector<4x256xf32>
    %47 = tpu.matmul %45, %46, %cst_41 {dimension_numbers = #tpu.dot_dimension_numbers<[1], [0], [0], [1], [0, 0, 1, 1], [], []>} : vector<4x36xbf16>, vector<36x256xbf16>, vector<4x256xf32> -> vector<4x256xf32>
    %c0_42 = arith.constant 0 : index
    %c0_43 = arith.constant 0 : index
    %48 = vector.load %arg6[%c0_42, %c0_43] : memref<4x1xf32, #tpu.memory_space<vmem>>, vector<4x1xf32>
    %49 = vector.broadcast %48 : vector<4x1xf32> to vector<4x256xf32>
    %50 = arith.addf %47, %49 : vector<4x256xf32>
    %cst_44 = arith.constant 0.000000e+00 : f32
    %51 = vector.broadcast %cst_44 : f32 to vector<4x256xf32>
    %52 = arith.maximumf %50, %51 : vector<4x256xf32>
    %c0_45 = arith.constant 0 : index
    %c0_46 = arith.constant 0 : index
    %53 = vector.load %arg7[%c0_45, %c0_46] : memref<8x4xbf16, #tpu.memory_space<vmem>>, vector<8x4xbf16>
    %54 = arith.truncf %52 : vector<4x256xf32> to vector<4x256xbf16>
    %cst_47 = arith.constant dense<0.000000e+00> : vector<8x256xf32>
    %55 = tpu.matmul %53, %54, %cst_47 {dimension_numbers = #tpu.dot_dimension_numbers<[1], [0], [0], [1], [0, 0, 1, 1], [], []>} : vector<8x4xbf16>, vector<4x256xbf16>, vector<8x256xf32> -> vector<8x256xf32>
    %c0_48 = arith.constant 0 : index
    %c0_49 = arith.constant 0 : index
    %56 = vector.load %arg8[%c0_48, %c0_49] : memref<8x1xf32, #tpu.memory_space<vmem>>, vector<8x1xf32>
    %57 = vector.broadcast %56 : vector<8x1xf32> to vector<8x256xf32>
    %58 = arith.addf %55, %57 : vector<8x256xf32>
    %59 = arith.extf %6 : vector<8x256xbf16> to vector<8x256xf32>
    %60 = arith.addf %58, %59 : vector<8x256xf32>
    %cst_50 = arith.constant 0.000000e+00 : f32
    %61 = vector.broadcast %cst_50 : f32 to vector<8x256xf32>
    %62 = arith.maximumf %60, %61 : vector<8x256xf32>
    %c0_51 = arith.constant 0 : index
    %c0_52 = arith.constant 0 : index
    %c0_53 = arith.constant 0 : index
    %63 = vector.load %arg9[%c0_51, %c0_52, %c0_53] : memref<1x8x256xf32, #tpu.memory_space<vmem>>, vector<1x8x256xf32>
    %64 = vector.shape_cast %63 : vector<1x8x256xf32> to vector<8x256xf32>
    %65 = vector.shape_cast %62 : vector<8x256xf32> to vector<1x8x256xf32>
    tpu.vector_store %arg9[%c0_51, %c0_52, %c0_53], %65 {strides = array<i32>} : memref<1x8x256xf32, #tpu.memory_space<vmem>>, vector<1x8x256xf32>,
    return
  }
  func.func @transform_0(%arg0: i32) -> (i32, i32, i32) {
    %c0_i32 = arith.constant 0 : i32
    %c0_i32_0 = arith.constant 0 : i32
    %c0_i32_1 = arith.constant 0 : i32
    return %arg0, %c0_i32, %c0_i32_0 : i32, i32, i32
  }
  func.func @transform_1(%arg0: i32) -> (i32, i32) {
    %c0_i32 = arith.constant 0 : i32
    %c0_i32_0 = arith.constant 0 : i32
    %c0_i32_1 = arith.constant 0 : i32
    return %c0_i32, %c0_i32_0 : i32, i32
  }
  func.func @transform_2(%arg0: i32) -> (i32, i32) {
    %c0_i32 = arith.constant 0 : i32
    %c0_i32_0 = arith.constant 0 : i32
    %c0_i32_1 = arith.constant 0 : i32
    return %c0_i32, %c0_i32_0 : i32, i32
  }
  func.func @transform_3(%arg0: i32) -> (i32, i32) {
    %c0_i32 = arith.constant 0 : i32
    %c0_i32_0 = arith.constant 0 : i32
    %c0_i32_1 = arith.constant 0 : i32
    return %c0_i32, %c0_i32_0 : i32, i32
  }
  func.func @transform_4(%arg0: i32) -> (i32, i32) {
    %c0_i32 = arith.constant 0 : i32
    %c0_i32_0 = arith.constant 0 : i32
    %c0_i32_1 = arith.constant 0 : i32
    return %c0_i32, %c0_i32_0 : i32, i32
  }
  func.func @transform_5(%arg0: i32) -> (i32, i32) {
    %c0_i32 = arith.constant 0 : i32
    %c0_i32_0 = arith.constant 0 : i32
    %c0_i32_1 = arith.constant 0 : i32
    return %c0_i32, %c0_i32_0 : i32, i32
  }
  func.func @transform_6(%arg0: i32) -> (i32, i32) {
    %c0_i32 = arith.constant 0 : i32
    %c0_i32_0 = arith.constant 0 : i32
    %c0_i32_1 = arith.constant 0 : i32
    return %c0_i32, %c0_i32_0 : i32, i32
  }
  func.func @transform_7(%arg0: i32) -> (i32, i32) {
    %c0_i32 = arith.constant 0 : i32
    %c0_i32_0 = arith.constant 0 : i32
    %c0_i32_1 = arith.constant 0 : i32
    return %c0_i32, %c0_i32_0 : i32, i32
  }
  func.func @transform_8(%arg0: i32) -> (i32, i32, i32) {
    %c0_i32 = arith.constant 0 : i32
    %c0_i32_0 = arith.constant 0 : i32
    %c0_i32_1 = arith.constant 0 : i32
    return %arg0, %c0_i32, %c0_i32_0 : i32, i32, i32
  }
}

</mosaic_0001>

<bundles_post_ra>
// kernel: tpu_custom_call.1
= control target key start
LH: loop header
LB: loop body
LE: loop exit
PB: predicated region body
PF: predicated region fallthrough
CT: control target
= control target key end

     0   :  { %13 = vsyncpa [#allocation5], 0  ;;  %s1353_s0 = inlined_call_operand.hbm [shape: bf16[2,8,256], index: 0, kind: input, shape index: {}]   ;;  %s1354_s1 = inlined_call_operand.vmem [shape: bf16[2,256], index: 1, kind: input, shape index: {}]   ;;  %s1355_s2 = inlined_call_operand.vmem [shape: bf16[4,8], index: 2, kind: input, shape index: {}]   ;;  %s1356_s3 = inlined_call_operand.vmem [shape: f32[4,1], index: 3, kind: input, shape index: {}]   ;;  %s1357_s4 = inlined_call_operand.vmem [shape: bf16[4,36], index: 4, kind: input, shape index: {}]   ;;  %s1358_s5 = inlined_call_operand.vmem [shape: f32[4,1], index: 5, kind: input, shape index: {}]   ;;  %s1359_s6 = inlined_call_operand.vmem [shape: bf16[8,4], index: 6, kind: input, shape index: {}]   ;;  %s1360_s7 = inlined_call_operand.vmem [shape: f32[8,1], index: 7, kind: input, shape index: {}]   ;;  %s1361_s8 = inlined_call_operand.hbm [shape: f32[2,8,256], index: 8, kind: output, shape index: {}]  }
   0x1   :  { %15 = vsyncpa [#allocation5 + $0x1], 0 }
   0x2   :  { %16 = vsyncpa [#allocation6], 0 }
   0x3   :  { %18 = vsyncpa [#allocation6 + $0x1], 0  ;;  %s1157_s27 = smov 0   ;;  %s1159_s28 = smov 0  }
   0x4   :  { %s1161_s29 = smov 0   ;;  %s1163_s30 = smov 0  }
   0x5 LB: > { %1363 = sst [smem:[#allocation10_spill]] %s1092_s29  ;;  %s1178_s9 = sadd.s32 4294967295, %s1096_s30   ;;  %s1096_s30 = sphi %s1163_s30, %s1375_s30   ;;  %s1092_s29 = sphi %s1161_s29, %s1372_s29   ;;  %s1088_s28 = sphi %s1159_s28, %s1374_s28   ;;  %s1084_s27 = sphi %s1157_s27, %s1373_s27  }
   0x6   : > { %s896_s10 = sadd.s32 4294967294, %s1096_s30   ;;  %s1182_s11 = sadd.s32 1, %s1096_s30  }
   0x7   : > { %s31_s12 = sadd.s32 1, %s1092_s29  ;;  %s28_s13 = ssub.s32 %s1096_s30, %s1182_s11 }
   0x8   : > { %p38_p0 = scmp.ne.s32.totalorder %s1092_s29, %s1088_s28  ;;  %p29_p1 = scmp.eq.s32.totalorder %s28_s13, 0 }
   0x9   : > { %p39_p2 = scmp.eq.s32.totalorder %s1096_s30, 0  ;;  %p44_p3 = scmp.ne.s32.totalorder %s1088_s28, %s1084_s27 }
   0xa   : > { %p45_p4 = scmp.eq.s32.totalorder %s1178_s9, 0  ;;  %p215_p7 = scmp.eq.s32.totalorder %s1178_s9, 1 }
   0xb   : > { %s1194_s14 = scalar_select %p29_p1, %s1092_s29, %s31_s12  }
   0xc   : > { %p1196_p5 = por %p39_p2, %p38_p0  ;;  %p1200_p6 = por %p45_p4, %p44_p3 }
   0xd   : > { %1364 = sst [smem:[#allocation11_spill]] %s1194_s14  ;;  %p221_p8 = scmp.eq.s32.totalorder %s896_s10, 1 }
   0xe   : > { %p950_p10 = scmp.lt.s32.totalorder %s1096_s30, 2  ;;  %p1207_p11 = por %p215_p7, %p38_p0 }
   0xf   : > { %p1211_p12 = por %p221_p8, %p44_p3  ;;  %s262_s19 = sand.u32 1, %s1092_s29  }
  0x10   : > { %s932_s20 = sshll.u32 %s1096_s30, 3  ;;  %s899_s21 = sshll.u32 %s262_s19, 3 }
  0x11   : > { %s271_s24 = scalar_lea.hbm %s1353_s0, %s932_s20  ;;  %s266_s26 = scalar_lea.vmem [#allocation4], %s899_s21 }
  0x12   : > { %s273_s25 = sshll.u32 %s271_s24, 4  ;;  %s275_s10 = sshll.u32 %s266_s26, 4  ;;  %s274_s25 = int_to_ptr.hbm [resolvable:$true] %s273_s25  ;;  %s276_s10 = int_to_ptr.vmem [resolvable:$true] %s275_s10 }
  0x13   : > { %p1222_p13 = pnand %p950_p10, %p1196_p5  ;;  %p902_p0 = scmp.ge.s32.totalorder %s1096_s30, 1 }
  0x14   : > { %p280_p1 = scmp.lt.s32.totalorder %s1096_s30, 3  ;;  %s263_s13 = scalar_lea.sflag [#allocation5], %s262_s19 }
  0x15   : > { %s1000_s14 = sshra.s32 %s274_s25, 4  ;;  %p1004_p3 = pneg %p1222_p13  ;;  %s1001_s14 = int_to_ptr.hbm [resolvable:$true] %s1000_s14 }
  0x16   : > { %s1002_s29 = scalar_lea.hbm %s1001_s14, 8  ;;  %s1007_s15 = scalar_lea.hbm %s1353_s0, 16 }
  0x17   : > { %p1003_p2 = scmp.ne.s32.totalorder %s1001_s14, %s1002_s29  ;;  %p1008_p5 = scmp.lt.s32.totalorder %s1001_s14, %s1353_s0 }
  0x18   : > { %p1009_p8 = scmp.lt.s32.totalorder %s1007_s15, %s1002_s29 }
  0x19   : > { %p1005_p4 = pnand %p1004_p3, %p1003_p2 }
  0x1a   : > { %p1010_p10 = por %p1009_p8, %p1008_p5 }
  0x1b   : > { %p1006_p7 = pneg %p1005_p4 }
  0x1d   : > { %p1011_p9 = pnand %p1010_p10, %p1006_p7 }
  0x1f   : > { %1014 = shalt.err (!%p1011_p9)
}
  0x20   : > { %945 = dma.hbm_to_vmem [thread:$0]  (!%p1222_p13), %s274_s25, 128, %s276_s10, %s263_s13  }
  0x21   : > { %p281_p2 = pnand %p902_p0, %p280_p1 }
  0x22   : > { %s1243_s19 = sand.u32 (!%p281_p2), 1, %s1088_s28  }
  0x23   : > { %284 = sbr.rel (%p281_p2) target bundleno = 947 (0x3b3), region = 52  ;;  %s903_s14 = sshll.u32 (!%p281_p2), %s1243_s19, 3 }
  0x24   : > { %s287_s29 = scalar_lea.sflag (!%p281_p2), [#allocation5], %s1243_s19  ;;  %s290_s24 = scalar_lea.vmem (!%p281_p2), [#allocation4], %s903_s14 }
  0x28   : > { %1075 = dma.done.wait (%p1200_p6), %s287_s29, 128  }
  0x29   : > { %1077 = vsyncadd (%p1200_p6), %s287_s29, 4294967168  ;;  %vm327_vm0 = vcmask 271496   ;;  %v1098_v0 = vmov 0   ;;  %vm325_vm1 = vcmask 132096   ;;  %v1251_v1 = vld [vmem:[%s290_s24] sm:$0xff]  ;;  %vm347_vm2 = vcmask 1043456  }
  0x2a   : > { %998 = vset.pattern.permute.xlu0 %v1098_v0  ;;  %328 = vst.msk [vmem:[#allocation2 + $0x4] sm:$0x3] %vm327_vm0, %v1098_v0  ;;  %999 = vset.pattern.permute.xlu1 %v1098_v0  ;;  %v332_v2 = vld [vmem:[%s1356_s3] sm:$0xf]  ;;  %v339_v3 = vunpack.c.l.b16 %v1251_v1  ;;  %v340_v4 = vunpack.c.h.b16 %v1251_v1  ;;  %vm343_vm3 = vcmask 64512   ;;  %vm385_vm4 = vcmask 1041408  }
  0x2b   : > { %326 = vst.msk [vmem:[#allocation2] sm:$0x3] %vm325_vm1, %v1098_v0  ;;  %335 = vperm.xlu0 %998, %v332_v2   ;;  %v331_v9 = vld [vmem:[%s1355_s2] sm:$0x3]  ;;  %s1099_s12 = smov 17   ;;  %vm396_vm5 = vcmask 1041544  }
  0x2c   : > { %v341_v5 = vpack.c.b16 %v339_v3, %v339_v3  ;;  %v342_v6 = vpack.c.b16 %v340_v4, %v340_v4  ;;  %v329_v22 = vld [vmem:[%s1354_s1] sm:$0x3]  ;;  %vm397_vm6 = vcmask 1043458   ;;  %vm399_vm8 = vcmask 136196   ;;  %s1100_s21 = smov 34   ;;  %s1101_s15 = smov 18  }
  0x2d   : > { %404 = vst [vmem:[#allocation1] ss:$9 sm:$0xff] %v329_v22  ;;  %vm398_vm7 = vmor %vm397_vm6, %vm396_vm5  ;;  %vm393_vm9 = vcmask 138240   ;;  %s1102_s22 = smov 2   ;;  %s1103_s23 = smov 127   ;;  %vm473_vm11 = vcmask 15360  }
  0x2e   : > { %v349_v7 = vsel %vm347_vm2, %v341_v5, 0  ;;  %v352_v8 = vsel %vm347_vm2, %v342_v6, 0  ;;  %vm400_vm10 = vmor %vm399_vm8, %vm398_vm7  ;;  %s1104_s14 = smov 32   ;;  %s1105_s29 = smov 16   ;;  %vm511_vm12 = vcmask 130048   ;;  %vm552_vm13 = vcmask 146432  }
  0x2f   : > { %361 = vmatpush.bf16.msra.mxu0 %v349_v7  ;;  %374 = vmatpush.bf16.msra.mxu1 %v352_v8  ;;  %vm592_vm14 = vcmask 261120   ;;  %s1106_s24 = smov 110   ;;  %vm649_vm15 = vcmask 277504   ;;  %s1107_s25 = smov 96   ;;  %vm582_vm0 = vcmask 900096   ;;  %vm620_vm1 = vcmask 785408  }
  0x30   : > { %s1108_s26 = smov 95   ;;  %s1109_s16 = smov 126   ;;  %vm501_vm5 = vcmask 1031168   ;;  %vm677_vm6 = vcmask 769024   ;;  %vm446_vm7 = vcmask 1039360   ;;  %vm541_vm8 = vcmask 916480  }
  0x31   : > { %s1110_s13 = smov 94   ;;  %s1111_s20 = smov 112  }
  0x32   : > { %905 = vmatmul.msk.bf16.vlgmr.msra.gmra.mxu0 %vm343_vm3, %v331_v9  ;;  %906 = vmatmul.msk.bf16.vlgmr.msra.gmra.mxu1 %vm343_vm3, %v331_v9  ;;  %vm639_vm3 = vcmask 777216  }
  0x34   : > { %v406_v23 = vld [vmem:[#allocation1 + $0x9] sm:$0xff]  ;;  %v405_v25 = vld [vmem:[#allocation1] sm:$0xff] }
  0x35   : > { %v410_v24 = vpack.i.b16 %v406_v23, %v406_v23  ;;  %v407_v26 = vpack.i.b16 %v405_v25, %v405_v25 }
  0x37   : > { %v412_v27 = vperm.slane %v410_v24, 0  ;;  %v409_v31 = vperm.slane %v407_v26, 0 }
  0x39   : > { %v415_v32 = vunpack.c.l.bf16 %v412_v27  ;;  %v414_v33 = vunpack.c.l.bf16 %v409_v31 }
  0x3b   : > { %v418_v34 = vrot.slane %v415_v32, 4 }
  0x3d   : > { %v419_v36 = vsel %vm347_vm2, %v414_v33, %v418_v34 }
  0x9d   : > { %v336_v10 = vpop.permute.xlu0 %335 }
  0xaf   : > { %v363_v11 = vpop.f32.mrf.mxu0  ;;  %v376_v12 = vpop.f32.mrf.mxu1 }
  0xb0   : > { %v364_v13 = vadd.f32 %v363_v11, %v336_v10  ;;  %v377_v14 = vadd.f32 %v376_v12, %v336_v10 }
  0xb2   : > { %v380_v15 = vmax.f32 %v364_v13, 0.0  ;;  %v381_v16 = vmax.f32 %v377_v14, 0.0 }
  0xb4   : > { %v382_v17 = vpack.c.bf16 %v381_v16, %v380_v15 }
  0xb6   : > { %545 = vst [vmem:[#allocation3 + $0x10] sm:$0x33] %v382_v17  ;;  %v384_v18 = vrot.slane %v382_v17, 2 }
  0xb7   : > { %v365_v19 = vpop.f32.mrf.mxu0  ;;  %v378_v20 = vpop.f32.mrf.mxu1 }
  0xb8   : > { %v388_v21 = vsel %vm385_vm4, %v382_v17, %v384_v18 }
  0xb9   : > { %390 = vrot.lane.b32.xlu0 %v388_v21, %s1099_s12 }
 0x12b   : > { %v391_v28 = vpop.permute.xlu0 %390 }
 0x12c   : > { %v392_v29 = vrot.slane %v391_v28, 6 }
 0x12e   : > { %v394_v30 = vsel %vm393_vm9, %v392_v29, %v391_v28  ;;  %vm765_vm9 = vcmask 31744  }
 0x12f   : > { %401 = vst.msk [vmem:[#allocation2] sm:$0x3f] %vm400_vm10, %v394_v30 }
 0x136   : > { %v402_v35 = vld [vmem:[#allocation2] sm:$0xf] }
 0x137   : > { %v413_v37 = vunpack.c.l.bf16 %v402_v35  ;;  %v430_v39 = vld [vmem:[#allocation2] sm:$0x3f] }
 0x138   : > { %v450_v57 = vld [vmem:[#allocation2] sm:$0x3f] }
 0x139   : > { %v421_v38 = vmul.f32 %v419_v36, %v413_v37  ;;  %v463_v59 = vunpack.c.h.bf16 %v450_v57  ;;  %v462_v61 = vunpack.c.l.bf16 %v450_v57  ;;  %v505_v2 = vld [vmem:[#allocation2] sm:$0x3f] }
 0x13a   : > { %v507_v5 = vunpack.c.h.bf16 %v505_v2  ;;  %v506_v7 = vunpack.c.l.bf16 %v505_v2  ;;  %v546_v15 = vld [vmem:[#allocation2] sm:$0x3f] }
 0x13b   : > { %423 = vst [vmem:[#allocation1] ss:$2 sm:$0xff] %v421_v38  ;;  %v547_v18 = vunpack.c.l.bf16 %v546_v15  ;;  %v548_v19 = vunpack.c.h.bf16 %v546_v15  ;;  %v586_v26 = vld [vmem:[#allocation2] sm:$0x3f] }
 0x13c   : > { %v587_v28 = vunpack.c.l.bf16 %v586_v26  ;;  %v588_v29 = vunpack.c.h.bf16 %v586_v26  ;;  %v643_v38 = vld [vmem:[#allocation2] sm:$0x3f] }
 0x142   : > { %v424_v40 = vld.sshfl [vmem:[#allocation1] sm:$0xff pattern:$0x75316420]  ;;  %v425_v41 = vld.sshfl [vmem:[#allocation1 + $0x8] sm:$0xff pattern:$0x75316420] }
 0x143   : > { %433 = vst [vmem:[#allocation1 + $0x1] ss:$2 sm:$0xff] %v430_v39  ;;  %v428_v42 = vpack.c.bf16 %v425_v41, %v424_v40 }
 0x145   : > { %429 = vst [vmem:[#allocation3] sm:$0x33] %v428_v42  ;;  %v645_v42 = vunpack.c.h.bf16 %v643_v38 }
 0x14a   : > { %v434_v43 = vld.sshfl [vmem:[#allocation1] sm:$0xff pattern:$0x75643120]  ;;  %v1268_v44 = vld.sshfl [vmem:[#allocation1 + $0x8] sm:$0xff pattern:$0x75643120] }
 0x14b   : > { %451 = vst [vmem:[#allocation1] ss:$9 sm:$0xff] %v329_v22 }
 0x152   : > { %v452_v45 = vld [vmem:[#allocation1] sm:$0xff]  ;;  %v453_v46 = vld [vmem:[#allocation1 + $0x9] sm:$0xff] }
 0x153   : > { %v454_v47 = vshrl.u32 %v452_v45, 16  ;;  %v458_v48 = vshrl.u32 %v453_v46, 16 }
 0x155   : > { %v455_v49 = vpack.i.b16 %v454_v47, %v454_v47  ;;  %v459_v50 = vpack.i.b16 %v458_v48, %v458_v48 }
 0x157   : > { %v457_v51 = vperm.slane %v455_v49, 0  ;;  %v461_v52 = vperm.slane %v459_v50, 0 }
 0x159   : > { %v465_v53 = vunpack.c.l.bf16 %v461_v52  ;;  %v464_v54 = vunpack.c.l.bf16 %v457_v51  ;;  %v644_v52 = vunpack.c.l.bf16 %v643_v38 }
 0x15b   : > { %v468_v55 = vrot.slane %v465_v53, 4 }
 0x15d   : > { %v469_v56 = vsel %vm347_vm2, %v464_v54, %v468_v55 }
 0x15e   : > { %646 = vrot.lane.b32.xlu0 %v469_v56, %s1100_s21  ;;  %549 = vrot.lane.b32.xlu2 %v469_v56, %s1101_s15 }
 0x15f   : > { %470 = vrot.lane.b32.xlu1 %v469_v56, %s1102_s22 }
 0x166   : > { %438 = vrot.lane.b32.xlu0 %v434_v43, %s1103_s23  ;;  %589 = vrot.lane.b32.xlu2 %v419_v36, %s1104_s14  ;;  %v624_v43 = vld [vmem:[#allocation2] sm:$0x3f]  ;;  %s1050_s14 = scalar_lea.hbm %s1361_s8, 32 }
 0x167   : > { %508 = vrot.lane.b32.xlu1 %v419_v36, %s1105_s29 }
 0x1b8   : > { %v550_v3 = vpop.permute.xlu2 %549 }
 0x1b9   : > { %v551_v10 = vrot.slane %v550_v3, 4 }
 0x1bb   : > { %v553_v16 = vsel %vm552_vm13, %v551_v10, %v550_v3  ;;  %v557_v22 = vmul.f32 %v551_v10, %v548_v19 }
 0x1bc   : > { %v556_v20 = vmul.f32 %v553_v16, %v547_v18 }
 0x1c0   : > { %v590_v17 = vpop.permute.xlu2 %589 }
 0x1c1   : > { %v591_v21 = vrot.slane %v590_v17, 4 }
 0x1c3   : > { %v593_v27 = vsel %vm592_vm14, %v591_v21, %v590_v17  ;;  %v597_v31 = vmul.f32 %v591_v21, %v588_v29 }
 0x1c4   : > { %v596_v30 = vmul.f32 %v593_v27, %v587_v28 }
 0x1d0   : > { %v647_v34 = vpop.permute.xlu0 %646 }
 0x1d1   : > { %v471_v58 = vpop.permute.xlu1 %470  ;;  %v648_v40 = vrot.slane %v647_v34, 4 }
 0x1d2   : > { %v472_v60 = vrot.slane %v471_v58, 4 }
 0x1d3   : > { %v654_v45 = vmul.f32 %v648_v40, %v645_v42  ;;  %v650_v51 = vsel %vm649_vm15, %v648_v40, %v647_v34 }
 0x1d4   : > { %v474_v62 = vsel %vm473_vm11, %v472_v60, %v471_v58  ;;  %v478_v63 = vmul.f32 %v472_v60, %v463_v59  ;;  %v653_v53 = vmul.f32 %v650_v51, %v644_v52 }
 0x1d5   : > { %v477_v0 = vmul.f32 %v474_v62, %v462_v61  ;;  %v687_v62 = vld [vmem:[%s1358_s5] sm:$0xf] }
 0x1d6   : > { %483 = vst [vmem:[#allocation1 + $0x10] ss:$2 sm:$0xff] %v478_v63 }
 0x1d7   : > { %481 = vst [vmem:[#allocation1] ss:$2 sm:$0xff] %v477_v0 }
 0x1d9   : > { %v509_v4 = vpop.permute.xlu1 %508 }
 0x1da   : > { %v510_v6 = vrot.slane %v509_v4, 4 }
 0x1dc   : > { %v512_v8 = vsel %vm511_vm12, %v510_v6, %v509_v4  ;;  %v516_v9 = vmul.f32 %v510_v6, %v507_v5  ;;  %v439_v6 = vpop.permute.xlu0 %438 }
 0x1dd   : > { %v1272_v11 = vld.sshfl [vmem:[#allocation1 + $0x10] sm:$0xff pattern:$0x75316420]  ;;  %v515_v12 = vmul.f32 %v512_v8, %v506_v7 }
 0x1de   : > { %v1274_v13 = vld.sshfl [vmem:[#allocation1] sm:$0xff pattern:$0x75316420]  ;;  %v1276_v14 = vld.sshfl [vmem:[#allocation1 + $0x8] sm:$0xff pattern:$0x75316420]  ;;  %v491_v56 = vpack.c.bf16 %v1272_v11, %v1272_v11 }
 0x1df   : > { %519 = vst [vmem:[#allocation1] ss:$2 sm:$0xff] %v515_v12  ;;  %v490_v63 = vpack.c.bf16 %v1276_v14, %v1274_v13 }
 0x1e0   : > { %521 = vst [vmem:[#allocation1 + $0x10] ss:$2 sm:$0xff] %v516_v9 }
 0x1e6   : > { %v1278_v23 = vld.sshfl [vmem:[#allocation1] sm:$0xff pattern:$0x75316420]  ;;  %v1280_v24 = vld.sshfl [vmem:[#allocation1 + $0x8] sm:$0xff pattern:$0x75316420] }
 0x1e7   : > { %v1282_v25 = vld.sshfl [vmem:[#allocation1 + $0x10] sm:$0xff pattern:$0x75316420]  ;;  %560 = vst [vmem:[#allocation1] ss:$2 sm:$0xff] %v556_v20  ;;  %v528_v2 = vpack.c.bf16 %v1280_v24, %v1278_v23 }
 0x1e8   : > { %562 = vst [vmem:[#allocation1 + $0x10] ss:$2 sm:$0xff] %v557_v22  ;;  %v529_v0 = vpack.c.bf16 %v1282_v25, %v1282_v25 }
 0x1e9   : > { %v532_v4 = vrot.slane %v528_v2, 6 }
 0x1ea   : > { %v533_v3 = vrot.slane %v529_v0, 6 }
 0x1ee   : > { %v563_v32 = vld.sshfl [vmem:[#allocation1] sm:$0xff pattern:$0x75316420]  ;;  %v564_v33 = vld.sshfl [vmem:[#allocation1 + $0x8] sm:$0xff pattern:$0x75316420] }
 0x1ef   : > { %v565_v35 = vld.sshfl [vmem:[#allocation1 + $0x10] sm:$0xff pattern:$0x75316420]  ;;  %v569_v36 = vpack.c.bf16 %v564_v33, %v563_v32  ;;  %600 = vst [vmem:[#allocation1] ss:$2 sm:$0xff] %v596_v30 }
 0x1f0   : > { %v570_v37 = vpack.c.bf16 %v565_v35, %v565_v35  ;;  %602 = vst [vmem:[#allocation1 + $0x10] ss:$2 sm:$0xff] %v597_v31 }
 0x1f1   : > { %v573_v39 = vrot.slane %v569_v36, 6  ;;  %v442_v36 = vrot.slane %v439_v6, 4 }
 0x1f2   : > { %v574_v41 = vrot.slane %v570_v37, 6 }
 0x1f3   : > { %575 = vrot.lane.b32.xlu0 %v573_v39, %s1106_s24 }
 0x1f4   : > { %577 = vrot.lane.b32.xlu1 %v574_v41, %s1106_s24  ;;  %s904_s24 = sshll.u32 %s1243_s19, 4 }
 0x1f5   : > { %s323_s12 = scalar_lea.vmem [#allocation7], %s904_s24 }
 0x1f6   : > { %v603_v46 = vld.sshfl [vmem:[#allocation1] sm:$0xff pattern:$0x75316420]  ;;  %v604_v47 = vld.sshfl [vmem:[#allocation1 + $0x8] sm:$0xff pattern:$0x75316420] }
 0x1f7   : > { %v609_v48 = vpack.c.bf16 %v604_v47, %v603_v46  ;;  %627 = vst [vmem:[#allocation1 + $0x1] ss:$2 sm:$0xff] %v624_v43  ;;  %v605_v49 = vld.sshfl [vmem:[#allocation1 + $0x10] sm:$0xff pattern:$0x75316420] }
 0x1f8   : > { %659 = vst [vmem:[#allocation1 + $0x10] ss:$2 sm:$0xff] %v654_v45  ;;  %v610_v50 = vpack.c.bf16 %v605_v49, %v605_v49 }
 0x1f9   : > { %613 = vrot.lane.b32.xlu2 %v609_v48, %s1107_s25 }
 0x1fb   : > { %615 = vrot.lane.b32.xlu0 %v610_v50, %s1107_s25  ;;  %s937_s25 = sshll.u32 %s1178_s9, 4 }
 0x1fc   : > { %s821_s10 = scalar_lea.hbm %s1361_s8, %s937_s25 }
 0x1fd   : > { %s825_s9 = sshll.u32 %s821_s10, 4  ;;  %s826_s9 = int_to_ptr.hbm [resolvable:$true] %s825_s9 }
 0x1fe   : > { %v628_v54 = vld.sshfl [vmem:[#allocation1] sm:$0xff pattern:$0x75643120]  ;;  %v630_v55 = vld.sshfl [vmem:[#allocation1 + $0x8] sm:$0xff pattern:$0x75643120] }
 0x1ff   : > { %632 = vrot.lane.b32.xlu1 %v628_v54, %s1108_s26  ;;  %657 = vst [vmem:[#allocation1] ss:$2 sm:$0xff] %v653_v53  ;;  %v662_v57 = vld.sshfl [vmem:[#allocation1 + $0x10] sm:$0xff pattern:$0x75316420]  ;;  %s1044_s21 = sshra.s32 %s826_s9, 4  ;;  %s1045_s21 = int_to_ptr.hbm [resolvable:$true] %s1044_s21 }
 0x200   : > { %v667_v61 = vpack.c.bf16 %v662_v57, %v662_v57  ;;  %s1046_s15 = scalar_lea.hbm %s1045_s21, 16  ;;  %p1051_p0 = scmp.lt.s32.totalorder %s1045_s21, %s1361_s8 }
 0x201   : > { %634 = vrot.lane.b32.xlu2 %v630_v55, %s1108_s26  ;;  %p1047_p6 = scmp.ne.s32.totalorder %s1045_s21, %s1046_s15  ;;  %p1052_p1 = scmp.lt.s32.totalorder %s1050_s14, %s1046_s15 }
 0x203   : > { %496 = vrot.lane.b32.xlu0 %v491_v56, %s1109_s16  ;;  %p1048_p9 = pnand %p1047_p6, %p1207_p11  ;;  %p1053_p3 = por %p1052_p1, %p1051_p0 }
 0x205   : > { %p1049_p13 = pneg %p1048_p9 }
 0x206   : > { %v660_v58 = vld.sshfl [vmem:[#allocation1] sm:$0xff pattern:$0x75316420]  ;;  %v661_v59 = vld.sshfl [vmem:[#allocation1 + $0x8] sm:$0xff pattern:$0x75316420] }
 0x207   : > { %v666_v60 = vpack.c.bf16 %v661_v59, %v660_v58  ;;  %p1054_p4 = pnand %p1053_p3, %p1049_p13 }
 0x209   : > { %670 = vrot.lane.b32.xlu1 %v666_v60, %s1110_s13  ;;  %672 = vrot.lane.b32.xlu2 %v667_v61, %s1110_s13  ;;  %s823_s13 = sshll.u32 %s323_s12, 4  ;;  %s824_s13 = int_to_ptr.vmem [resolvable:$true] %s823_s13 }
 0x20b   : > { %690 = vperm.xlu0 %998, %v687_v62  }
 0x211   : > { %440 = vrot.lane.b32.xlu1 %v1268_v44, %s1103_s23  ;;  %494 = vrot.lane.b32.xlu2 %v490_v63, %s1109_s16 }
 0x219   : > { %536 = vrot.lane.b32.xlu2 %v533_v3, %s1111_s20  ;;  %534 = vrot.lane.b32.xlu1 %v532_v4, %s1111_s20  ;;  %v681_v3 = vld [vmem:[%s1357_s4] sm:$0x3]  ;;  %s810_s20 = scalar_lea.sflag [#allocation6], %s1243_s19 }
 0x21a   : > { %v759_v4 = vld [vmem:[%s1360_s7] sm:$0xff] }
 0x221   : > { %762 = vperm.xlu1 %999, %v759_v4  }
 0x253   : > { %v614_v5 = vpop.permute.xlu2 %613 }
 0x254   : > { %v617_v15 = vrot.slane %v614_v5, 4 }
 0x25b   : > { %v635_v7 = vpop.permute.xlu2 %634 }
 0x25c   : > { %v637_v20 = vrot.slane %v635_v7, 4 }
 0x263   : > { %v673_v44 = vpop.permute.xlu2 %672 }
 0x264   : > { %v675_v31 = vrot.slane %v673_v44, 4 }
 0x265   : > { %v576_v8 = vpop.permute.xlu0 %575 }
 0x266   : > { %v578_v9 = vpop.permute.xlu1 %577  ;;  %v579_v10 = vrot.slane %v576_v8, 4 }
 0x267   : > { %v580_v11 = vrot.slane %v578_v9, 4 }
 0x269   : > { %v581_v12 = vsel %vm347_vm2, %v579_v10, %v580_v11 }
 0x26a   : > { %v583_v13 = vsel %vm582_vm0, %v576_v8, %v581_v12 }
 0x26b   : > { %585 = vst [vmem:[#allocation3 + $0x10] sm:$0xcc] %v583_v13  ;;  %v495_v22 = vpop.permute.xlu2 %494 }
 0x26c   : > { %v498_v26 = vrot.slane %v495_v22, 4 }
 0x26d   : > { %v616_v14 = vpop.permute.xlu0 %615 }
 0x26e   : > { %v618_v16 = vrot.slane %v616_v14, 4 }
 0x270   : > { %v619_v17 = vsel %vm347_vm2, %v617_v15, %v618_v16 }
 0x271   : > { %v621_v18 = vsel %vm620_vm1, %v614_v5, %v619_v17  ;;  %v633_v19 = vpop.permute.xlu1 %632  ;;  %v756_v17 = vld [vmem:[%s1359_s6] sm:$0xf] }
 0x272   : > { %623 = vst [vmem:[#allocation3 + $0x18] sm:$0x33] %v621_v18  ;;  %v636_v21 = vrot.slane %v633_v19, 4  ;;  %v917_v55 = vld [vmem:[#allocation3 + $0x10] sm:$0xf] }
 0x273   : > { %v537_v43 = vpop.permute.xlu2 %536  ;;  %v935_v56 = vld [vmem:[#allocation3 + $0x14] sm:$0xf] }
 0x274   : > { %v638_v23 = vsel %vm347_vm2, %v636_v21, %v637_v20  ;;  %v539_v49 = vrot.slane %v537_v43, 4  ;;  %v802_v20 = vunpack.c.h.bf16 %v1251_v1 }
 0x275   : > { %v640_v24 = vsel %vm639_vm3, %v633_v19, %v638_v23  ;;  %v497_v25 = vpop.permute.xlu0 %496  ;;  %v801_v19 = vunpack.c.l.bf16 %v1251_v1 }
 0x276   : > { %642 = vst [vmem:[#allocation3 + $0x18] sm:$0xcc] %v640_v24  ;;  %v499_v27 = vrot.slane %v497_v25, 4 }
 0x278   : > { %v500_v28 = vsel %vm347_vm2, %v498_v26, %v499_v27 }
 0x279   : > { %v502_v29 = vsel %vm501_vm5, %v495_v22, %v500_v28 }
 0x27a   : > { %504 = vst [vmem:[#allocation3 + $0x8] sm:$0x33] %v502_v29 }
 0x27b   : > { %v671_v30 = vpop.permute.xlu1 %670 }
 0x27c   : > { %v674_v32 = vrot.slane %v671_v30, 4 }
 0x27d   : > { %v936_v48 = vld [vmem:[#allocation3 + $0x14] sm:$0xf0]  ;;  %v919_v53 = vld [vmem:[#allocation3 + $0x18] sm:$0xf0]  ;;  %v691_v5 = vpop.permute.xlu0 %690 }
 0x27e   : > { %v676_v33 = vsel %vm347_vm2, %v674_v32, %v675_v31  ;;  %v918_v58 = vor.u32 %v936_v48, %v917_v55  ;;  %v922_v59 = vor.u32 %v935_v56, %v919_v53 }
 0x27f   : > { %v678_v34 = vsel %vm677_vm6, %v671_v30, %v676_v33 }
 0x280   : > { %680 = vst [vmem:[#allocation3 + $0x20] sm:$0x33] %v678_v34 }
 0x283   : > { %v441_v35 = vpop.permute.xlu1 %440 }
 0x284   : > { %v443_v37 = vrot.slane %v441_v35, 4 }
 0x286   : > { %v445_v38 = vsel %vm347_vm2, %v442_v36, %v443_v37 }
 0x287   : > { %v447_v39 = vsel %vm446_vm7, %v439_v6, %v445_v38  ;;  %v686_v40 = vld [vmem:[#allocation3 + $0x20] sm:$0x33] }
 0x288   : > { %449 = vst [vmem:[#allocation3] sm:$0xcc] %v447_v39  ;;  %v706_v41 = vunpack.c.l.b16 %v686_v40  ;;  %v707_v42 = vunpack.c.h.b16 %v686_v40 }
 0x28a   : > { %v712_v45 = vpack.c.b16 %v706_v41, %v706_v41  ;;  %v713_v46 = vpack.c.b16 %v707_v42, %v707_v42 }
 0x28b   : > { %v535_v47 = vpop.permute.xlu1 %534 }
 0x28c   : > { %v538_v50 = vrot.slane %v535_v47, 4  ;;  %v723_v51 = vsel %vm385_vm4, %v712_v45, 0  ;;  %v726_v52 = vsel %vm385_vm4, %v713_v46, 0 }
 0x28d   : > { %733 = vmatpush.bf16.msra.mxu2 %v723_v51  ;;  %746 = vmatpush.bf16.msra.mxu3 %v726_v52 }
 0x28e   : > { %v540_v54 = vsel %vm347_vm2, %v538_v50, %v539_v49  ;;  %vm718_vm2 = vcmask 293888  }
 0x28f   : > { %v542_v57 = vsel %vm541_vm8, %v535_v47, %v540_v54  ;;  %v909_v60 = vld [vmem:[#allocation3] sm:$0xf]  ;;  %v933_v62 = vld [vmem:[#allocation3 + $0x4] sm:$0xf] }
 0x290   : > { %544 = vst [vmem:[#allocation3 + $0x8] sm:$0xcc] %v542_v57 }
 0x291   : > { %734 = vmatpush.bf16.msra.mxu2 %v918_v58  ;;  %747 = vmatpush.bf16.msra.mxu3 %v922_v59 }
 0x293   : > { %v763_v18 = vpop.permute.xlu1 %762 }
 0x297   : > { %v934_v61 = vld [vmem:[#allocation3 + $0x4] sm:$0xf0]  ;;  %v911_v63 = vld [vmem:[#allocation3 + $0x8] sm:$0xf0] }
 0x298   : > { %v910_v0 = vor.u32 %v934_v61, %v909_v60  ;;  %v914_v2 = vor.u32 %v933_v62, %v911_v63 }
 0x29a   : > { %735 = vmatpush.bf16.msra.mxu2 %v910_v0  ;;  %748 = vmatpush.bf16.msra.mxu3 %v914_v2 }
 0x29d   : > { %923 = vmatmul.msk.bf16.vlgmr.msra.gmra.mxu2 %vm718_vm2, %v681_v3  ;;  %924 = vmatmul.msk.bf16.vlgmr.msra.gmra.mxu3 %vm718_vm2, %v681_v3 }
 0x320   : > { %v737_v6 = vpop.f32.mrf.mxu2  ;;  %v750_v7 = vpop.f32.mrf.mxu3 }
 0x321   : > { %v738_v8 = vadd.f32 %v737_v6, %v691_v5  ;;  %v751_v9 = vadd.f32 %v750_v7, %v691_v5 }
 0x323   : > { %v754_v10 = vmax.f32 %v738_v8, 0.0  ;;  %v755_v11 = vmax.f32 %v751_v9, 0.0 }
 0x325   : > { %v757_v44 = vpack.c.bf16 %v754_v10, %v754_v10  ;;  %v758_v12 = vpack.c.bf16 %v755_v11, %v755_v11 }
 0x327   : > { %v770_v13 = vsel %vm385_vm4, %v757_v44, 0  ;;  %v773_v14 = vsel %vm385_vm4, %v758_v12, 0 }
 0x328   : > { %v739_v15 = vpop.f32.mrf.mxu2  ;;  %v752_v16 = vpop.f32.mrf.mxu3  ;;  %782 = vmatpush.bf16.msrb.mxu0 %v770_v13  ;;  %795 = vmatpush.bf16.msrb.mxu1 %v773_v14 }
 0x32b   : > { %925 = vmatmul.msk.bf16.vlgmr.msrb.gmra.mxu0 %vm765_vm9, %v756_v17  ;;  %926 = vmatmul.msk.bf16.vlgmr.msrb.gmra.mxu1 %vm765_vm9, %v756_v17 }
 0x3a8   : > { %v784_v21 = vpop.f32.mrf.mxu0  ;;  %v797_v22 = vpop.f32.mrf.mxu1 }
 0x3a9   : > { %v785_v23 = vadd.f32 %v784_v21, %v763_v18  ;;  %v798_v24 = vadd.f32 %v797_v22, %v763_v18 }
 0x3ab   : > { %v803_v25 = vadd.f32 %v801_v19, %v785_v23  ;;  %v804_v26 = vadd.f32 %v802_v20, %v798_v24 }
 0x3ad   : > { %v805_v27 = vmax.f32 %v803_v25, 0.0  ;;  %v806_v28 = vmax.f32 %v804_v26, 0.0 }
 0x3af   : > { %807 = vst [vmem:[%s323_s12] sm:$0xff] %v805_v27 }
 0x3b0   : > { %808 = vst [vmem:[%s323_s12 + $0x8] sm:$0xff] %v806_v28  ;;  %v786_v1 = vpop.f32.mrf.mxu0  ;;  %v799_v29 = vpop.f32.mrf.mxu1 }
 0x3b1   : > { %1057 = shalt.err (!%p1054_p4)
}
 0x3b2   : > { %940 = dma.vmem_to_hbm [thread:$0]  (%p1207_p11), %s824_s13, 256, %s826_s9, %s810_s20  }
 0x3b3 PF: > { %s837_s19 = sand.u32 1, %s1084_s27   ;;  %p1370_p7 = scmp.ge.s32.totalorder %s1096_s30, 2 }
 0x3b4   : > { %s838_s25 = scalar_lea.sflag [#allocation6], %s837_s19 }
 0x3b5   : > { %p947_p5 = pnand %p1370_p7, %p1211_p12 }
 0x3b7   : > { %p948_p8 = pneg %p947_p5 }
 0x3b9   : > { %1079 = dma.done.wait (%p948_p8), %s838_s25, 256  }
 0x3ba   : > { %1081 = vsyncadd (%p948_p8), %s838_s25, 4294967040  ;;  %s1371_s26 = sld [smem:[#allocation10_spill]]  ;;  %p21_p10 = scmp.ge.s32.totalorder %s1182_s11, 4  }
 0x3bb   : > { %s1372_s29 = sld [smem:[#allocation11_spill]]  ;;  %s1373_s27 = smov %s1088_s28 }
 0x3bc   : > { %s1375_s30 = smov %s1182_s11  ;;  %23 = sbr.rel (!%p21_p10) target bundleno = 5 (0x5), region = 104 }
 0x3c0   : > { %s1374_s28 = smov %s1371_s26 }
 0x3c1   :  { %844 = vsyncpa [#allocation5], 1 }
 0x3c2   :  { %846 = vsyncpa [#allocation5 + $0x1], 1 }
 0x3c3   :  { %847 = vsyncpa [#allocation6], 1 }
 0x3c4   :  { %849 = vsyncpa [#allocation6 + $0x1], 1 }

// kernel: tpu_custom_call.1
= control target key start
LH: loop header
LB: loop body
LE: loop exit
PB: predicated region body
PF: predicated region fallthrough
CT: control target
= control target key end

     0   :  { %13 = vsyncpa [#allocation5], 0  ;;  %s1353_s0 = inlined_call_operand.hbm [shape: bf16[2,8,256], index: 0, kind: input, shape index: {}]   ;;  %s1354_s1 = inlined_call_operand.vmem [shape: bf16[2,256], index: 1, kind: input, shape index: {}]   ;;  %s1355_s2 = inlined_call_operand.vmem [shape: bf16[4,8], index: 2, kind: input, shape index: {}]   ;;  %s1356_s3 = inlined_call_operand.vmem [shape: f32[4,1], index: 3, kind: input, shape index: {}]   ;;  %s1357_s4 = inlined_call_operand.vmem [shape: bf16[4,36], index: 4, kind: input, shape index: {}]   ;;  %s1358_s5 = inlined_call_operand.vmem [shape: f32[4,1], index: 5, kind: input, shape index: {}]   ;;  %s1359_s6 = inlined_call_operand.vmem [shape: bf16[8,4], index: 6, kind: input, shape index: {}]   ;;  %s1360_s7 = inlined_call_operand.vmem [shape: f32[8,1], index: 7, kind: input, shape index: {}]   ;;  %s1361_s8 = inlined_call_operand.hbm [shape: f32[2,8,256], index: 8, kind: output, shape index: {}]  }
   0x1   :  { %15 = vsyncpa [#allocation5 + $0x1], 0 }
   0x2   :  { %16 = vsyncpa [#allocation6], 0 }
   0x3   :  { %18 = vsyncpa [#allocation6 + $0x1], 0  ;;  %s1157_s27 = smov 0   ;;  %s1159_s28 = smov 0  }
   0x4   :  { %s1161_s29 = smov 0   ;;  %s1163_s30 = smov 0  }
   0x5 LB: > { %1363 = sst [smem:[#allocation10_spill]] %s1092_s29  ;;  %s1178_s9 = sadd.s32 4294967295, %s1096_s30   ;;  %s1096_s30 = sphi %s1163_s30, %s1375_s30   ;;  %s1092_s29 = sphi %s1161_s29, %s1372_s29   ;;  %s1088_s28 = sphi %s1159_s28, %s1374_s28   ;;  %s1084_s27 = sphi %s1157_s27, %s1373_s27  }
   0x6   : > { %s896_s10 = sadd.s32 4294967294, %s1096_s30   ;;  %s1182_s11 = sadd.s32 1, %s1096_s30  }
   0x7   : > { %s31_s12 = sadd.s32 1, %s1092_s29  ;;  %s28_s13 = ssub.s32 %s1096_s30, %s1182_s11 }
   0x8   : > { %p38_p0 = scmp.ne.s32.totalorder %s1092_s29, %s1088_s28  ;;  %p29_p1 = scmp.eq.s32.totalorder %s28_s13, 0 }
   0x9   : > { %p39_p2 = scmp.eq.s32.totalorder %s1096_s30, 0  ;;  %p44_p3 = scmp.ne.s32.totalorder %s1088_s28, %s1084_s27 }
   0xa   : > { %p45_p4 = scmp.eq.s32.totalorder %s1178_s9, 0  ;;  %p215_p7 = scmp.eq.s32.totalorder %s1178_s9, 1 }
   0xb   : > { %s1194_s14 = scalar_select %p29_p1, %s1092_s29, %s31_s12  }
   0xc   : > { %p1196_p5 = por %p39_p2, %p38_p0  ;;  %p1200_p6 = por %p45_p4, %p44_p3 }
   0xd   : > { %1364 = sst [smem:[#allocation11_spill]] %s1194_s14  ;;  %p221_p8 = scmp.eq.s32.totalorder %s896_s10, 1 }
   0xe   : > { %p950_p10 = scmp.lt.s32.totalorder %s1096_s30, 2  ;;  %p1207_p11 = por %p215_p7, %p38_p0 }
   0xf   : > { %p1211_p12 = por %p221_p8, %p44_p3  ;;  %s262_s19 = sand.u32 1, %s1092_s29  }
  0x10   : > { %s932_s20 = sshll.u32 %s1096_s30, 3  ;;  %s899_s21 = sshll.u32 %s262_s19, 3 }
  0x11   : > { %s271_s24 = scalar_lea.hbm %s1353_s0, %s932_s20  ;;  %s266_s26 = scalar_lea.vmem [#allocation4], %s899_s21 }
  0x12   : > { %s273_s25 = sshll.u32 %s271_s24, 4  ;;  %s275_s10 = sshll.u32 %s266_s26, 4  ;;  %s274_s25 = int_to_ptr.hbm [resolvable:$true] %s273_s25  ;;  %s276_s10 = int_to_ptr.vmem [resolvable:$true] %s275_s10 }
  0x13   : > { %p1222_p13 = pnand %p950_p10, %p1196_p5  ;;  %p902_p0 = scmp.ge.s32.totalorder %s1096_s30, 1 }
  0x14   : > { %p280_p1 = scmp.lt.s32.totalorder %s1096_s30, 3  ;;  %s263_s13 = scalar_lea.sflag [#allocation5], %s262_s19 }
  0x15   : > { %s1000_s14 = sshra.s32 %s274_s25, 4  ;;  %p1004_p3 = pneg %p1222_p13  ;;  %s1001_s14 = int_to_ptr.hbm [resolvable:$true] %s1000_s14 }
  0x16   : > { %s1002_s29 = scalar_lea.hbm %s1001_s14, 8  ;;  %s1007_s15 = scalar_lea.hbm %s1353_s0, 16 }
  0x17   : > { %p1003_p2 = scmp.ne.s32.totalorder %s1001_s14, %s1002_s29  ;;  %p1008_p5 = scmp.lt.s32.totalorder %s1001_s14, %s1353_s0 }
  0x18   : > { %p1009_p8 = scmp.lt.s32.totalorder %s1007_s15, %s1002_s29 }
  0x19   : > { %p1005_p4 = pnand %p1004_p3, %p1003_p2 }
  0x1a   : > { %p1010_p10 = por %p1009_p8, %p1008_p5 }
  0x1b   : > { %p1006_p7 = pneg %p1005_p4 }
  0x1d   : > { %p1011_p9 = pnand %p1010_p10, %p1006_p7 }
  0x1f   : > { %1014 = shalt.err (!%p1011_p9)
}
  0x20   : > { %945 = dma.hbm_to_vmem [thread:$0]  (!%p1222_p13), %s274_s25, 128, %s276_s10, %s263_s13  }
  0x21   : > { %p281_p2 = pnand %p902_p0, %p280_p1 }
  0x22   : > { %s1243_s19 = sand.u32 (!%p281_p2), 1, %s1088_s28  }
  0x23   : > { %284 = sbr.rel (%p281_p2) target bundleno = 947 (0x3b3), region = 52  ;;  %s903_s14 = sshll.u32 (!%p281_p2), %s1243_s19, 3 }
  0x24   : > { %s287_s29 = scalar_lea.sflag (!%p281_p2), [#allocation5], %s1243_s19  ;;  %s290_s24 = scalar_lea.vmem (!%p281_p2), [#allocation4], %s903_s14 }
  0x28   : > { %1075 = dma.done.wait (%p1200_p6), %s287_s29, 128  }
  0x29   : > { %1077 = vsyncadd (%p1200_p6), %s287_s29, 4294967168  ;;  %vm327_vm0 = vcmask 271496   ;;  %v1098_v0 = vmov 0   ;;  %vm325_vm1 = vcmask 132096   ;;  %v1251_v1 = vld [vmem:[%s290_s24] sm:$0xff]  ;;  %vm347_vm2 = vcmask 1043456  }
  0x2a   : > { %998 = vset.pattern.permute.xlu0 %v1098_v0  ;;  %328 = vst.msk [vmem:[#allocation2 + $0x4] sm:$0x3] %vm327_vm0, %v1098_v0  ;;  %999 = vset.pattern.permute.xlu1 %v1098_v0  ;;  %v332_v2 = vld [vmem:[%s1356_s3] sm:$0xf]  ;;  %v339_v3 = vunpack.c.l.b16 %v1251_v1  ;;  %v340_v4 = vunpack.c.h.b16 %v1251_v1  ;;  %vm343_vm3 = vcmask 64512   ;;  %vm385_vm4 = vcmask 1041408  }
  0x2b   : > { %326 = vst.msk [vmem:[#allocation2] sm:$0x3] %vm325_vm1, %v1098_v0  ;;  %335 = vperm.xlu0 %998, %v332_v2   ;;  %v331_v9 = vld [vmem:[%s1355_s2] sm:$0x3]  ;;  %s1099_s12 = smov 17   ;;  %vm396_vm5 = vcmask 1041544  }
  0x2c   : > { %v341_v5 = vpack.c.b16 %v339_v3, %v339_v3  ;;  %v342_v6 = vpack.c.b16 %v340_v4, %v340_v4  ;;  %v329_v22 = vld [vmem:[%s1354_s1] sm:$0x3]  ;;  %vm397_vm6 = vcmask 1043458   ;;  %vm399_vm8 = vcmask 136196   ;;  %s1100_s21 = smov 34   ;;  %s1101_s15 = smov 18  }
  0x2d   : > { %404 = vst [vmem:[#allocation1] ss:$9 sm:$0xff] %v329_v22  ;;  %vm398_vm7 = vmor %vm397_vm6, %vm396_vm5  ;;  %vm393_vm9 = vcmask 138240   ;;  %s1102_s22 = smov 2   ;;  %s1103_s23 = smov 127   ;;  %vm473_vm11 = vcmask 15360  }
  0x2e   : > { %v349_v7 = vsel %vm347_vm2, %v341_v5, 0  ;;  %v352_v8 = vsel %vm347_vm2, %v342_v6, 0  ;;  %vm400_vm10 = vmor %vm399_vm8, %vm398_vm7  ;;  %s1104_s14 = smov 32   ;;  %s1105_s29 = smov 16   ;;  %vm511_vm12 = vcmask 130048   ;;  %vm552_vm13 = vcmask 146432  }
  0x2f   : > { %361 = vmatpush.bf16.msra.mxu0 %v349_v7  ;;  %374 = vmatpush.bf16.msra.mxu1 %v352_v8  ;;  %vm592_vm14 = vcmask 261120   ;;  %s1106_s24 = smov 110   ;;  %vm649_vm15 = vcmask 277504   ;;  %s1107_s25 = smov 96   ;;  %vm582_vm0 = vcmask 900096   ;;  %vm620_vm1 = vcmask 785408  }
  0x30   : > { %s1108_s26 = smov 95   ;;  %s1109_s16 = smov 126   ;;  %vm501_vm5 = vcmask 1031168   ;;  %vm677_vm6 = vcmask 769024   ;;  %vm446_vm7 = vcmask 1039360   ;;  %vm541_vm8 = vcmask 916480  }
  0x31   : > { %s1110_s13 = smov 94   ;;  %s1111_s20 = smov 112  }
  0x32   : > { %905 = vmatmul.msk.bf16.vlgmr.msra.gmra.mxu0 %vm343_vm3, %v331_v9  ;;  %906 = vmatmul.msk.bf16.vlgmr.msra.gmra.mxu1 %vm343_vm3, %v331_v9  ;;  %vm639_vm3 = vcmask 777216  }
  0x34   : > { %v406_v23 = vld [vmem:[#allocation1 + $0x9] sm:$0xff]  ;;  %v405_v25 = vld [vmem:[#allocation1] sm:$0xff] }
  0x35   : > { %v410_v24 = vpack.i.b16 %v406_v23, %v406_v23  ;;  %v407_v26 = vpack.i.b16 %v405_v25, %v405_v25 }
  0x37   : > { %v412_v27 = vperm.slane %v410_v24, 0  ;;  %v409_v31 = vperm.slane %v407_v26, 0 }
  0x39   : > { %v415_v32 = vunpack.c.l.bf16 %v412_v27  ;;  %v414_v33 = vunpack.c.l.bf16 %v409_v31 }
  0x3b   : > { %v418_v34 = vrot.slane %v415_v32, 4 }
  0x3d   : > { %v419_v36 = vsel %vm347_vm2, %v414_v33, %v418_v34 }
  0x9d   : > { %v336_v10 = vpop.permute.xlu0 %335 }
  0xaf   : > { %v363_v11 = vpop.f32.mrf.mxu0  ;;  %v376_v12 = vpop.f32.mrf.mxu1 }
  0xb0   : > { %v364_v13 = vadd.f32 %v363_v11, %v336_v10  ;;  %v377_v14 = vadd.f32 %v376_v12, %v336_v10 }
  0xb2   : > { %v380_v15 = vmax.f32 %v364_v13, 0.0  ;;  %v381_v16 = vmax.f32 %v377_v14, 0.0 }
  0xb4   : > { %v382_v17 = vpack.c.bf16 %v381_v16, %v380_v15 }
  0xb6   : > { %545 = vst [vmem:[#allocation3 + $0x10] sm:$0x33] %v382_v17  ;;  %v384_v18 = vrot.slane %v382_v17, 2 }
  0xb7   : > { %v365_v19 = vpop.f32.mrf.mxu0  ;;  %v378_v20 = vpop.f32.mrf.mxu1 }
  0xb8   : > { %v388_v21 = vsel %vm385_vm4, %v382_v17, %v384_v18 }
  0xb9   : > { %390 = vrot.lane.b32.xlu0 %v388_v21, %s1099_s12 }
 0x12b   : > { %v391_v28 = vpop.permute.xlu0 %390 }
 0x12c   : > { %v392_v29 = vrot.slane %v391_v28, 6 }
 0x12e   : > { %v394_v30 = vsel %vm393_vm9, %v392_v29, %v391_v28  ;;  %vm765_vm9 = vcmask 31744  }
 0x12f   : > { %401 = vst.msk [vmem:[#allocation2] sm:$0x3f] %vm400_vm10, %v394_v30 }
 0x136   : > { %v402_v35 = vld [vmem:[#allocation2] sm:$0xf] }
 0x137   : > { %v413_v37 = vunpack.c.l.bf16 %v402_v35  ;;  %v430_v39 = vld [vmem:[#allocation2] sm:$0x3f] }
 0x138   : > { %v450_v57 = vld [vmem:[#allocation2] sm:$0x3f] }
 0x139   : > { %v421_v38 = vmul.f32 %v419_v36, %v413_v37  ;;  %v463_v59 = vunpack.c.h.bf16 %v450_v57  ;;  %v462_v61 = vunpack.c.l.bf16 %v450_v57  ;;  %v505_v2 = vld [vmem:[#allocation2] sm:$0x3f] }
 0x13a   : > { %v507_v5 = vunpack.c.h.bf16 %v505_v2  ;;  %v506_v7 = vunpack.c.l.bf16 %v505_v2  ;;  %v546_v15 = vld [vmem:[#allocation2] sm:$0x3f] }
 0x13b   : > { %423 = vst [vmem:[#allocation1] ss:$2 sm:$0xff] %v421_v38  ;;  %v547_v18 = vunpack.c.l.bf16 %v546_v15  ;;  %v548_v19 = vunpack.c.h.bf16 %v546_v15  ;;  %v586_v26 = vld [vmem:[#allocation2] sm:$0x3f] }
 0x13c   : > { %v587_v28 = vunpack.c.l.bf16 %v586_v26  ;;  %v588_v29 = vunpack.c.h.bf16 %v586_v26  ;;  %v643_v38 = vld [vmem:[#allocation2] sm:$0x3f] }
 0x142   : > { %v424_v40 = vld.sshfl [vmem:[#allocation1] sm:$0xff pattern:$0x75316420]  ;;  %v425_v41 = vld.sshfl [vmem:[#allocation1 + $0x8] sm:$0xff pattern:$0x75316420] }
 0x143   : > { %433 = vst [vmem:[#allocation1 + $0x1] ss:$2 sm:$0xff] %v430_v39  ;;  %v428_v42 = vpack.c.bf16 %v425_v41, %v424_v40 }
 0x145   : > { %429 = vst [vmem:[#allocation3] sm:$0x33] %v428_v42  ;;  %v645_v42 = vunpack.c.h.bf16 %v643_v38 }
 0x14a   : > { %v434_v43 = vld.sshfl [vmem:[#allocation1] sm:$0xff pattern:$0x75643120]  ;;  %v1268_v44 = vld.sshfl [vmem:[#allocation1 + $0x8] sm:$0xff pattern:$0x75643120] }
 0x14b   : > { %451 = vst [vmem:[#allocation1] ss:$9 sm:$0xff] %v329_v22 }
 0x152   : > { %v452_v45 = vld [vmem:[#allocation1] sm:$0xff]  ;;  %v453_v46 = vld [vmem:[#allocation1 + $0x9] sm:$0xff] }
 0x153   : > { %v454_v47 = vshrl.u32 %v452_v45, 16  ;;  %v458_v48 = vshrl.u32 %v453_v46, 16 }
 0x155   : > { %v455_v49 = vpack.i.b16 %v454_v47, %v454_v47  ;;  %v459_v50 = vpack.i.b16 %v458_v48, %v458_v48 }
 0x157   : > { %v457_v51 = vperm.slane %v455_v49, 0  ;;  %v461_v52 = vperm.slane %v459_v50, 0 }
 0x159   : > { %v465_v53 = vunpack.c.l.bf16 %v461_v52  ;;  %v464_v54 = vunpack.c.l.bf16 %v457_v51  ;;  %v644_v52 = vunpack.c.l.bf16 %v643_v38 }
 0x15b   : > { %v468_v55 = vrot.slane %v465_v53, 4 }
 0x15d   : > { %v469_v56 = vsel %vm347_vm2, %v464_v54, %v468_v55 }
 0x15e   : > { %646 = vrot.lane.b32.xlu0 %v469_v56, %s1100_s21  ;;  %549 = vrot.lane.b32.xlu2 %v469_v56, %s1101_s15 }
 0x15f   : > { %470 = vrot.lane.b32.xlu1 %v469_v56, %s1102_s22 }
 0x166   : > { %438 = vrot.lane.b32.xlu0 %v434_v43, %s1103_s23  ;;  %589 = vrot.lane.b32.xlu2 %v419_v36, %s1104_s14  ;;  %v624_v43 = vld [vmem:[#allocation2] sm:$0x3f]  ;;  %s1050_s14 = scalar_lea.hbm %s1361_s8, 32 }
 0x167   : > { %508 = vrot.lane.b32.xlu1 %v419_v36, %s1105_s29 }
 0x1b8   : > { %v550_v3 = vpop.permute.xlu2 %549 }
 0x1b9   : > { %v551_v10 = vrot.slane %v550_v3, 4 }
 0x1bb   : > { %v553_v16 = vsel %vm552_vm13, %v551_v10, %v550_v3  ;;  %v557_v22 = vmul.f32 %v551_v10, %v548_v19 }
 0x1bc   : > { %v556_v20 = vmul.f32 %v553_v16, %v547_v18 }
 0x1c0   : > { %v590_v17 = vpop.permute.xlu2 %589 }
 0x1c1   : > { %v591_v21 = vrot.slane %v590_v17, 4 }
 0x1c3   : > { %v593_v27 = vsel %vm592_vm14, %v591_v21, %v590_v17  ;;  %v597_v31 = vmul.f32 %v591_v21, %v588_v29 }
 0x1c4   : > { %v596_v30 = vmul.f32 %v593_v27, %v587_v28 }
 0x1d0   : > { %v647_v34 = vpop.permute.xlu0 %646 }
 0x1d1   : > { %v471_v58 = vpop.permute.xlu1 %470  ;;  %v648_v40 = vrot.slane %v647_v34, 4 }
 0x1d2   : > { %v472_v60 = vrot.slane %v471_v58, 4 }
 0x1d3   : > { %v654_v45 = vmul.f32 %v648_v40, %v645_v42  ;;  %v650_v51 = vsel %vm649_vm15, %v648_v40, %v647_v34 }
 0x1d4   : > { %v474_v62 = vsel %vm473_vm11, %v472_v60, %v471_v58  ;;  %v478_v63 = vmul.f32 %v472_v60, %v463_v59  ;;  %v653_v53 = vmul.f32 %v650_v51, %v644_v52 }
 0x1d5   : > { %v477_v0 = vmul.f32 %v474_v62, %v462_v61  ;;  %v687_v62 = vld [vmem:[%s1358_s5] sm:$0xf] }
 0x1d6   : > { %483 = vst [vmem:[#allocation1 + $0x10] ss:$2 sm:$0xff] %v478_v63 }
 0x1d7   : > { %481 = vst [vmem:[#allocation1] ss:$2 sm:$0xff] %v477_v0 }
 0x1d9   : > { %v509_v4 = vpop.permute.xlu1 %508 }
 0x1da   : > { %v510_v6 = vrot.slane %v509_v4, 4 }
 0x1dc   : > { %v512_v8 = vsel %vm511_vm12, %v510_v6, %v509_v4  ;;  %v516_v9 = vmul.f32 %v510_v6, %v507_v5  ;;  %v439_v6 = vpop.permute.xlu0 %438 }
 0x1dd   : > { %v1272_v11 = vld.sshfl [vmem:[#allocation1 + $0x10] sm:$0xff pattern:$0x75316420]  ;;  %v515_v12 = vmul.f32 %v512_v8, %v506_v7 }
 0x1de   : > { %v1274_v13 = vld.sshfl [vmem:[#allocation1] sm:$0xff pattern:$0x75316420]  ;;  %v1276_v14 = vld.sshfl [vmem:[#allocation1 + $0x8] sm:$0xff pattern:$0x75316420]  ;;  %v491_v56 = vpack.c.bf16 %v1272_v11, %v1272_v11 }
 0x1df   : > { %519 = vst [vmem:[#allocation1] ss:$2 sm:$0xff] %v515_v12  ;;  %v490_v63 = vpack.c.bf16 %v1276_v14, %v1274_v13 }
 0x1e0   : > { %521 = vst [vmem:[#allocation1 + $0x10] ss:$2 sm:$0xff] %v516_v9 }
 0x1e6   : > { %v1278_v23 = vld.sshfl [vmem:[#allocation1] sm:$0xff pattern:$0x75316420]  ;;  %v1280_v24 = vld.sshfl [vmem:[#allocation1 + $0x8] sm:$0xff pattern:$0x75316420] }
 0x1e7   : > { %v1282_v25 = vld.sshfl [vmem:[#allocation1 + $0x10] sm:$0xff pattern:$0x75316420]  ;;  %560 = vst [vmem:[#allocation1] ss:$2 sm:$0xff] %v556_v20  ;;  %v528_v2 = vpack.c.bf16 %v1280_v24, %v1278_v23 }
 0x1e8   : > { %562 = vst [vmem:[#allocation1 + $0x10] ss:$2 sm:$0xff] %v557_v22  ;;  %v529_v0 = vpack.c.bf16 %v1282_v25, %v1282_v25 }
 0x1e9   : > { %v532_v4 = vrot.slane %v528_v2, 6 }
 0x1ea   : > { %v533_v3 = vrot.slane %v529_v0, 6 }
 0x1ee   : > { %v563_v32 = vld.sshfl [vmem:[#allocation1] sm:$0xff pattern:$0x75316420]  ;;  %v564_v33 = vld.sshfl [vmem:[#allocation1 + $0x8] sm:$0xff pattern:$0x75316420] }
 0x1ef   : > { %v565_v35 = vld.sshfl [vmem:[#allocation1 + $0x10] sm:$0xff pattern:$0x75316420]  ;;  %v569_v36 = vpack.c.bf16 %v564_v33, %v563_v32  ;;  %600 = vst [vmem:[#allocation1] ss:$2 sm:$0xff] %v596_v30 }
 0x1f0   : > { %v570_v37 = vpack.c.bf16 %v565_v35, %v565_v35  ;;  %602 = vst [vmem:[#allocation1 + $0x10] ss:$2 sm:$0xff] %v597_v31 }
 0x1f1   : > { %v573_v39 = vrot.slane %v569_v36, 6  ;;  %v442_v36 = vrot.slane %v439_v6, 4 }
 0x1f2   : > { %v574_v41 = vrot.slane %v570_v37, 6 }
 0x1f3   : > { %575 = vrot.lane.b32.xlu0 %v573_v39, %s1106_s24 }
 0x1f4   : > { %577 = vrot.lane.b32.xlu1 %v574_v41, %s1106_s24  ;;  %s904_s24 = sshll.u32 %s1243_s19, 4 }
 0x1f5   : > { %s323_s12 = scalar_lea.vmem [#allocation7], %s904_s24 }
 0x1f6   : > { %v603_v46 = vld.sshfl [vmem:[#allocation1] sm:$0xff pattern:$0x75316420]  ;;  %v604_v47 = vld.sshfl [vmem:[#allocation1 + $0x8] sm:$0xff pattern:$0x75316420] }
 0x1f7   : > { %v609_v48 = vpack.c.bf16 %v604_v47, %v603_v46  ;;  %627 = vst [vmem:[#allocation1 + $0x1] ss:$2 sm:$0xff] %v624_v43  ;;  %v605_v49 = vld.sshfl [vmem:[#allocation1 + $0x10] sm:$0xff pattern:$0x75316420] }
 0x1f8   : > { %659 = vst [vmem:[#allocation1 + $0x10] ss:$2 sm:$0xff] %v654_v45  ;;  %v610_v50 = vpack.c.bf16 %v605_v49, %v605_v49 }
 0x1f9   : > { %613 = vrot.lane.b32.xlu2 %v609_v48, %s1107_s25 }
 0x1fb   : > { %615 = vrot.lane.b32.xlu0 %v610_v50, %s1107_s25  ;;  %s937_s25 = sshll.u32 %s1178_s9, 4 }
 0x1fc   : > { %s821_s10 = scalar_lea.hbm %s1361_s8, %s937_s25 }
 0x1fd   : > { %s825_s9 = sshll.u32 %s821_s10, 4  ;;  %s826_s9 = int_to_ptr.hbm [resolvable:$true] %s825_s9 }
 0x1fe   : > { %v628_v54 = vld.sshfl [vmem:[#allocation1] sm:$0xff pattern:$0x75643120]  ;;  %v630_v55 = vld.sshfl [vmem:[#allocation1 + $0x8] sm:$0xff pattern:$0x75643120] }
 0x1ff   : > { %632 = vrot.lane.b32.xlu1 %v628_v54, %s1108_s26  ;;  %657 = vst [vmem:[#allocation1] ss:$2 sm:$0xff] %v653_v53  ;;  %v662_v57 = vld.sshfl [vmem:[#allocation1 + $0x10] sm:$0xff pattern:$0x75316420]  ;;  %s1044_s21 = sshra.s32 %s826_s9, 4  ;;  %s1045_s21 = int_to_ptr.hbm [resolvable:$true] %s1044_s21 }
 0x200   : > { %v667_v61 = vpack.c.bf16 %v662_v57, %v662_v57  ;;  %s1046_s15 = scalar_lea.hbm %s1045_s21, 16  ;;  %p1051_p0 = scmp.lt.s32.totalorder %s1045_s21, %s1361_s8 }
 0x201   : > { %634 = vrot.lane.b32.xlu2 %v630_v55, %s1108_s26  ;;  %p1047_p6 = scmp.ne.s32.totalorder %s1045_s21, %s1046_s15  ;;  %p1052_p1 = scmp.lt.s32.totalorder %s1050_s14, %s1046_s15 }
 0x203   : > { %496 = vrot.lane.b32.xlu0 %v491_v56, %s1109_s16  ;;  %p1048_p9 = pnand %p1047_p6, %p1207_p11  ;;  %p1053_p3 = por %p1052_p1, %p1051_p0 }
 0x205   : > { %p1049_p13 = pneg %p1048_p9 }
 0x206   : > { %v660_v58 = vld.sshfl [vmem:[#allocation1] sm:$0xff pattern:$0x75316420]  ;;  %v661_v59 = vld.sshfl [vmem:[#allocation1 + $0x8] sm:$0xff pattern:$0x75316420] }
 0x207   : > { %v666_v60 = vpack.c.bf16 %v661_v59, %v660_v58  ;;  %p1054_p4 = pnand %p1053_p3, %p1049_p13 }
 0x209   : > { %670 = vrot.lane.b32.xlu1 %v666_v60, %s1110_s13  ;;  %672 = vrot.lane.b32.xlu2 %v667_v61, %s1110_s13  ;;  %s823_s13 = sshll.u32 %s323_s12, 4  ;;  %s824_s13 = int_to_ptr.vmem [resolvable:$true] %s823_s13 }
 0x20b   : > { %690 = vperm.xlu0 %998, %v687_v62  }
 0x211   : > { %440 = vrot.lane.b32.xlu1 %v1268_v44, %s1103_s23  ;;  %494 = vrot.lane.b32.xlu2 %v490_v63, %s1109_s16 }
 0x219   : > { %536 = vrot.lane.b32.xlu2 %v533_v3, %s1111_s20  ;;  %534 = vrot.lane.b32.xlu1 %v532_v4, %s1111_s20  ;;  %v681_v3 = vld [vmem:[%s1357_s4] sm:$0x3]  ;;  %s810_s20 = scalar_lea.sflag [#allocation6], %s1243_s19 }
 0x21a   : > { %v759_v4 = vld [vmem:[%s1360_s7] sm:$0xff] }
 0x221   : > { %762 = vperm.xlu1 %999, %v759_v4  }
 0x253   : > { %v614_v5 = vpop.permute.xlu2 %613 }
 0x254   : > { %v617_v15 = vrot.slane %v614_v5, 4 }
 0x25b   : > { %v635_v7 = vpop.permute.xlu2 %634 }
 0x25c   : > { %v637_v20 = vrot.slane %v635_v7, 4 }
 0x263   : > { %v673_v44 = vpop.permute.xlu2 %672 }
 0x264   : > { %v675_v31 = vrot.slane %v673_v44, 4 }
 0x265   : > { %v576_v8 = vpop.permute.xlu0 %575 }
 0x266   : > { %v578_v9 = vpop.permute.xlu1 %577  ;;  %v579_v10 = vrot.slane %v576_v8, 4 }
 0x267   : > { %v580_v11 = vrot.slane %v578_v9, 4 }
 0x269   : > { %v581_v12 = vsel %vm347_vm2, %v579_v10, %v580_v11 }
 0x26a   : > { %v583_v13 = vsel %vm582_vm0, %v576_v8, %v581_v12 }
 0x26b   : > { %585 = vst [vmem:[#allocation3 + $0x10] sm:$0xcc] %v583_v13  ;;  %v495_v22 = vpop.permute.xlu2 %494 }
 0x26c   : > { %v498_v26 = vrot.slane %v495_v22, 4 }
 0x26d   : > { %v616_v14 = vpop.permute.xlu0 %615 }
 0x26e   : > { %v618_v16 = vrot.slane %v616_v14, 4 }
 0x270   : > { %v619_v17 = vsel %vm347_vm2, %v617_v15, %v618_v16 }
 0x271   : > { %v621_v18 = vsel %vm620_vm1, %v614_v5, %v619_v17  ;;  %v633_v19 = vpop.permute.xlu1 %632  ;;  %v756_v17 = vld [vmem:[%s1359_s6] sm:$0xf] }
 0x272   : > { %623 = vst [vmem:[#allocation3 + $0x18] sm:$0x33] %v621_v18  ;;  %v636_v21 = vrot.slane %v633_v19, 4  ;;  %v917_v55 = vld [vmem:[#allocation3 + $0x10] sm:$0xf] }
 0x273   : > { %v537_v43 = vpop.permute.xlu2 %536  ;;  %v935_v56 = vld [vmem:[#allocation3 + $0x14] sm:$0xf] }
 0x274   : > { %v638_v23 = vsel %vm347_vm2, %v636_v21, %v637_v20  ;;  %v539_v49 = vrot.slane %v537_v43, 4  ;;  %v802_v20 = vunpack.c.h.bf16 %v1251_v1 }
 0x275   : > { %v640_v24 = vsel %vm639_vm3, %v633_v19, %v638_v23  ;;  %v497_v25 = vpop.permute.xlu0 %496  ;;  %v801_v19 = vunpack.c.l.bf16 %v1251_v1 }
 0x276   : > { %642 = vst [vmem:[#allocation3 + $0x18] sm:$0xcc] %v640_v24  ;;  %v499_v27 = vrot.slane %v497_v25, 4 }
 0x278   : > { %v500_v28 = vsel %vm347_vm2, %v498_v26, %v499_v27 }
 0x279   : > { %v502_v29 = vsel %vm501_vm5, %v495_v22, %v500_v28 }
 0x27a   : > { %504 = vst [vmem:[#allocation3 + $0x8] sm:$0x33] %v502_v29 }
 0x27b   : > { %v671_v30 = vpop.permute.xlu1 %670 }
 0x27c   : > { %v674_v32 = vrot.slane %v671_v30, 4 }
 0x27d   : > { %v936_v48 = vld [vmem:[#allocation3 + $0x14] sm:$0xf0]  ;;  %v919_v53 = vld [vmem:[#allocation3 + $0x18] sm:$0xf0]  ;;  %v691_v5 = vpop.permute.xlu0 %690 }
 0x27e   : > { %v676_v33 = vsel %vm347_vm2, %v674_v32, %v675_v31  ;;  %v918_v58 = vor.u32 %v936_v48, %v917_v55  ;;  %v922_v59 = vor.u32 %v935_v56, %v919_v53 }
 0x27f   : > { %v678_v34 = vsel %vm677_vm6, %v671_v30, %v676_v33 }
 0x280   : > { %680 = vst [vmem:[#allocation3 + $0x20] sm:$0x33] %v678_v34 }
 0x283   : > { %v441_v35 = vpop.permute.xlu1 %440 }
 0x284   : > { %v443_v37 = vrot.slane %v441_v35, 4 }
 0x286   : > { %v445_v38 = vsel %vm347_vm2, %v442_v36, %v443_v37 }
 0x287   : > { %v447_v39 = vsel %vm446_vm7, %v439_v6, %v445_v38  ;;  %v686_v40 = vld [vmem:[#allocation3 + $0x20] sm:$0x33] }
 0x288   : > { %449 = vst [vmem:[#allocation3] sm:$0xcc] %v447_v39  ;;  %v706_v41 = vunpack.c.l.b16 %v686_v40  ;;  %v707_v42 = vunpack.c.h.b16 %v686_v40 }
 0x28a   : > { %v712_v45 = vpack.c.b16 %v706_v41, %v706_v41  ;;  %v713_v46 = vpack.c.b16 %v707_v42, %v707_v42 }
 0x28b   : > { %v535_v47 = vpop.permute.xlu1 %534 }
 0x28c   : > { %v538_v50 = vrot.slane %v535_v47, 4  ;;  %v723_v51 = vsel %vm385_vm4, %v712_v45, 0  ;;  %v726_v52 = vsel %vm385_vm4, %v713_v46, 0 }
 0x28d   : > { %733 = vmatpush.bf16.msra.mxu2 %v723_v51  ;;  %746 = vmatpush.bf16.msra.mxu3 %v726_v52 }
 0x28e   : > { %v540_v54 = vsel %vm347_vm2, %v538_v50, %v539_v49  ;;  %vm718_vm2 = vcmask 293888  }
 0x28f   : > { %v542_v57 = vsel %vm541_vm8, %v535_v47, %v540_v54  ;;  %v909_v60 = vld [vmem:[#allocation3] sm:$0xf]  ;;  %v933_v62 = vld [vmem:[#allocation3 + $0x4] sm:$0xf] }
 0x290   : > { %544 = vst [vmem:[#allocation3 + $0x8] sm:$0xcc] %v542_v57 }
 0x291   : > { %734 = vmatpush.bf16.msra.mxu2 %v918_v58  ;;  %747 = vmatpush.bf16.msra.mxu3 %v922_v59 }
 0x293   : > { %v763_v18 = vpop.permute.xlu1 %762 }
 0x297   : > { %v934_v61 = vld [vmem:[#allocation3 + $0x4] sm:$0xf0]  ;;  %v911_v63 = vld [vmem:[#allocation3 + $0x8] sm:$0xf0] }
 0x298   : > { %v910_v0 = vor.u32 %v934_v61, %v909_v60  ;;  %v914_v2 = vor.u32 %v933_v62, %v911_v63 }
 0x29a   : > { %735 = vmatpush.bf16.msra.mxu2 %v910_v0  ;;  %748 = vmatpush.bf16.msra.mxu3 %v914_v2 }
 0x29d   : > { %923 = vmatmul.msk.bf16.vlgmr.msra.gmra.mxu2 %vm718_vm2, %v681_v3  ;;  %924 = vmatmul.msk.bf16.vlgmr.msra.gmra.mxu3 %vm718_vm2, %v681_v3 }
 0x320   : > { %v737_v6 = vpop.f32.mrf.mxu2  ;;  %v750_v7 = vpop.f32.mrf.mxu3 }
 0x321   : > { %v738_v8 = vadd.f32 %v737_v6, %v691_v5  ;;  %v751_v9 = vadd.f32 %v750_v7, %v691_v5 }
 0x323   : > { %v754_v10 = vmax.f32 %v738_v8, 0.0  ;;  %v755_v11 = vmax.f32 %v751_v9, 0.0 }
 0x325   : > { %v757_v44 = vpack.c.bf16 %v754_v10, %v754_v10  ;;  %v758_v12 = vpack.c.bf16 %v755_v11, %v755_v11 }
 0x327   : > { %v770_v13 = vsel %vm385_vm4, %v757_v44, 0  ;;  %v773_v14 = vsel %vm385_vm4, %v758_v12, 0 }
 0x328   : > { %v739_v15 = vpop.f32.mrf.mxu2  ;;  %v752_v16 = vpop.f32.mrf.mxu3  ;;  %782 = vmatpush.bf16.msrb.mxu0 %v770_v13  ;;  %795 = vmatpush.bf16.msrb.mxu1 %v773_v14 }
 0x32b   : > { %925 = vmatmul.msk.bf16.vlgmr.msrb.gmra.mxu0 %vm765_vm9, %v756_v17  ;;  %926 = vmatmul.msk.bf16.vlgmr.msrb.gmra.mxu1 %vm765_vm9, %v756_v17 }
 0x3a8   : > { %v784_v21 = vpop.f32.mrf.mxu0  ;;  %v797_v22 = vpop.f32.mrf.mxu1 }
 0x3a9   : > { %v785_v23 = vadd.f32 %v784_v21, %v763_v18  ;;  %v798_v24 = vadd.f32 %v797_v22, %v763_v18 }
 0x3ab   : > { %v803_v25 = vadd.f32 %v801_v19, %v785_v23  ;;  %v804_v26 = vadd.f32 %v802_v20, %v798_v24 }
 0x3ad   : > { %v805_v27 = vmax.f32 %v803_v25, 0.0  ;;  %v806_v28 = vmax.f32 %v804_v26, 0.0 }
 0x3af   : > { %807 = vst [vmem:[%s323_s12] sm:$0xff] %v805_v27 }
 0x3b0   : > { %808 = vst [vmem:[%s323_s12 + $0x8] sm:$0xff] %v806_v28  ;;  %v786_v1 = vpop.f32.mrf.mxu0  ;;  %v799_v29 = vpop.f32.mrf.mxu1 }
 0x3b1   : > { %1057 = shalt.err (!%p1054_p4)
}
 0x3b2   : > { %940 = dma.vmem_to_hbm [thread:$0]  (%p1207_p11), %s824_s13, 256, %s826_s9, %s810_s20  }
 0x3b3 PF: > { %s837_s19 = sand.u32 1, %s1084_s27   ;;  %p1370_p7 = scmp.ge.s32.totalorder %s1096_s30, 2 }
 0x3b4   : > { %s838_s25 = scalar_lea.sflag [#allocation6], %s837_s19 }
 0x3b5   : > { %p947_p5 = pnand %p1370_p7, %p1211_p12 }
 0x3b7   : > { %p948_p8 = pneg %p947_p5 }
 0x3b9   : > { %1079 = dma.done.wait (%p948_p8), %s838_s25, 256  }
 0x3ba   : > { %1081 = vsyncadd (%p948_p8), %s838_s25, 4294967040  ;;  %s1371_s26 = sld [smem:[#allocation10_spill]]  ;;  %p21_p10 = scmp.ge.s32.totalorder %s1182_s11, 4  }
 0x3bb   : > { %s1372_s29 = sld [smem:[#allocation11_spill]]  ;;  %s1373_s27 = smov %s1088_s28 }
 0x3bc   : > { %s1375_s30 = smov %s1182_s11  ;;  %23 = sbr.rel (!%p21_p10) target bundleno = 5 (0x5), region = 104 }
 0x3c0   : > { %s1374_s28 = smov %s1371_s26 }
 0x3c1   :  { %844 = vsyncpa [#allocation5], 1 }
 0x3c2   :  { %846 = vsyncpa [#allocation5 + $0x1], 1 }
 0x3c3   :  { %847 = vsyncpa [#allocation6], 1 }
 0x3c4   :  { %849 = vsyncpa [#allocation6 + $0x1], 1 }

</bundles_post_ra>
